<compile_context>
chip_gen: v5e
topology: v5e:2x2
jax: 0.10.0
libtpu: 0.0.40
codegen_flags: <defaults>
</compile_context>

<pallas_src>
import numpy as np

import jax
import jax.numpy as jnp
from jax.experimental import pallas as pl
from jax.experimental.pallas import tpu as pltpu


def _vmem_spec():
    return pl.BlockSpec(memory_space=pltpu.MemorySpace.VMEM)


def _align8(x):
    return ((x + 7) // 8) * 8


def _make_band(w_dy, w, cin, cout, parity):
    """Band matrix (w*cin, w*cout) for one dy tap-row of a 3x3 'same' convolution.

    x-padding is folded in (taps falling outside [0, w) are dropped — they would only
    multiply zeros).  With activations laid out one VMEM row per image row and columns
    = x*cin + ci,   rows[y + dy] @ band   is this dy's contribution to conv output row
    y.  If `parity` is set, OUTPUT columns are reordered to [even-x | odd-x] halves
    (column = half*(w//2)*cout + (x//2)*cout + co) so the 2x max-pool along x becomes a
    single lane-half maximum.
    """
    band = np.zeros((w * cin, w * cout), np.float32)
    half = w // 2
    for x in range(w):
        blk = ((x // 2) + (half if (x % 2) else 0)) if parity else x
        for dx in range(3):
            xin = x + dx - 1
            if 0 <= xin < w:
                band[xin * cin:(xin + 1) * cin, blk * cout:(blk + 1) * cout] = w_dy[dx]
    return band


class ConvClassifierPallas:
    """JAX/Pallas port of hw2.models.ConvClassifier (synthetic deterministic params)."""

    def __init__(self, in_size, out_classes, filters, pool_every, hidden_dims, key):
        self.in_size = in_size
        self.out_classes = out_classes
        self.filters = filters
        self.pool_every = pool_every
        self.hidden_dims = hidden_dims

        c, h, w = in_size
        n_params = 2 * (len(filters) + len(hidden_dims) + 1)
        keys = iter(jax.random.split(key, n_params))

        # --- feature-extractor params + static per-layer geometry --------------------
        self.conv_params = []          # raw (3,3,cin,cout), (cout,) -- used by reference
        self.layer_meta = []           # static shapes / pool flags per conv layer
        in_c = c
        count = 0
        for out_c in filters:
            fan_in = 9 * in_c
            W = jax.random.normal(next(keys), (3, 3, in_c, out_c), jnp.float32) / jnp.sqrt(fan_in)
            B = jax.random.normal(next(keys), (out_c,), jnp.float32) * 0.01
            self.conv_params.append((W, B))
            count += 1
            pool = (count == pool_every)
            if pool:
                count = 0
            self.layer_meta.append(dict(cin=in_c, cout=out_c, h=h, w=w,
                                        hpa=_align8(h + 2), pool=pool))
            if pool:
                h //= 2
                w //= 2
            in_c = out_c
        if count != 0:
            # Trailing MaxPool2d(2), mirroring the torch module when N % P != 0.
            self.layer_meta[-1]['pool'] = True
            h //= 2
            w //= 2
        self.feat_h, self.feat_w, self.feat_c = h, w, filters[-1]
        # The last conv layer is always followed by a pool (explicit or forced trailing).
        assert self.layer_meta[-1]['pool']

        # --- classifier params (raw; rows in torch's (c, y, x) flatten order) --------
        in_dim = self.feat_c * self.feat_h * self.feat_w
        self.fc_params = []
        for hidden in hidden_dims:
            W = jax.random.normal(next(keys), (in_dim, hidden), jnp.float32) / jnp.sqrt(in_dim)
            B = jax.random.normal(next(keys), (hidden,), jnp.float32) * 0.01
            self.fc_params.append((W, B))
            in_dim = hidden
        W = jax.random.normal(next(keys), (in_dim, out_classes), jnp.float32) / jnp.sqrt(in_dim)
        B = jax.random.normal(next(keys), (out_classes,), jnp.float32) * 0.01
        self.fc_params.append((W, B))

        # --- static weight preprocessing for the fused kernel (zero runtime cost) ----
        # (a) banded conv matrices (x-padding folded in; pooled layers parity-reordered)
        self.conv_bands = []           # (3, w*cin, w*cout) per conv layer
        self.conv_brow = []            # (1, w*cout)        per conv layer
        for (Wc, Bc), m in zip(self.conv_params, self.layer_meta):
            wnp = np.asarray(Wc)
            bands = np.stack([_make_band(wnp[dy], m['w'], m['cin'], m['cout'], m['pool'])
                              for dy in range(3)], axis=0)
            self.conv_bands.append(jnp.asarray(bands))
            self.conv_brow.append(jnp.asarray(
                np.tile(np.asarray(Bc), m['w']).reshape(1, -1).astype(np.float32)))
        # (b) fold torch's (c, y, x) flatten into FC1, split per feature row so the head
        #     consumes the pooled rows in their natural (y, x, c) row layout via feat_h
        #     block matmuls — no runtime flatten, no per-row scatter.
        w0, b0 = self.fc_params[0]
        hid0 = w0.shape[1]
        self.fc1_row_w = self.feat_w * self.feat_c
        w0p = (np.asarray(w0)
               .reshape(self.feat_c, self.feat_h, self.feat_w, hid0)
               .transpose(1, 2, 0, 3)
               .reshape(self.feat_h, self.fc1_row_w, hid0))
        self.fc1_blocks = jnp.asarray(w0p)                       # (feat_h, row_w, hid0)
        self.fc1_bias = b0.reshape(1, -1)
        self.fc_rest = [(Wf, Bf.reshape(1, -1)) for Wf, Bf in self.fc_params[1:]]
        self.feat_stride = _align8(self.feat_h)                  # aligned per-image stride

    # ------------------------------------------------------------------ forward (Pallas)
    def forward(self, x_nchw):
        n = x_nchw.shape[0]
        m0 = self.layer_meta[0]
        # Input layout prep: NCHW -> per-image y-padded row layout (one VMEM row per
        # image row, columns = (x, channel); no x-pad columns, pad rows sublane-aligned).
        # TODO(synk): this initial 4-D transpose/pad stays in XLA; it has no clean,
        # low-risk in-kernel Mosaic equivalent and is negligible at this size (~4 KiB).
        xt = jnp.transpose(x_nchw, (0, 2, 3, 1))
        xp = jnp.pad(xt, ((0, 0), (1, m0['hpa'] - m0['h'] - 1), (0, 0), (0, 0)))
        x_rows = xp.reshape(n * m0['hpa'], m0['w'] * m0['cin'])
        return self._fused_forward(x_rows, n)

    def _fused_forward(self, x_rows, n):
        metas = self.layer_meta
        nconv = len(metas)
        nfc_rest = len(self.fc_rest)
        feat_h = self.feat_h
        row_w = self.fc1_row_w
        fhA = self.feat_stride

        # kernel inputs: padded input rows + preprocessed weights (all VMEM-resident)
        inputs = [x_rows]
        for bands, brow in zip(self.conv_bands, self.conv_brow):
            inputs += [bands, brow]
        inputs += [self.fc1_blocks, self.fc1_bias]
        for Wf, Bf in self.fc_rest:
            inputs += [Wf, Bf]
        num_in = len(inputs)

        # VMEM scratch: per-layer padded activation rows (layers 1..L-1) + feature rows
        scratch = []
        scratch_bytes = 0
        pad_idx = {}
        for i in range(1, nconv):
            m = metas[i]
            shp = (n * m['hpa'], m['w'] * m['cin'])
            pad_idx[i] = len(scratch)
            scratch.append(pltpu.VMEM(shp, jnp.float32))
            scratch_bytes += int(np.prod(shp)) * 4
        feat_idx = len(scratch)
        feat_shp = (n * fhA, row_w)
        scratch.append(pltpu.VMEM(feat_shp, jnp.float32))
        scratch_bytes += int(np.prod(feat_shp)) * 4

        def kernel(*refs):
            in_refs = refs[:num_in]
            out_ref = refs[num_in]
            s_refs = refs[num_in + 1:]

            band_refs = [in_refs[1 + 2 * i] for i in range(nconv)]
            brow_refs = [in_refs[2 + 2 * i] for i in range(nconv)]
            fc1_w_ref = in_refs[1 + 2 * nconv]
            fc1_b_ref = in_refs[2 + 2 * nconv]
            rest_w = [in_refs[3 + 2 * nconv + 2 * j] for j in range(nfc_rest)]
            rest_b = [in_refs[4 + 2 * nconv + 2 * j] for j in range(nfc_rest)]
            feat_ref = s_refs[feat_idx]

            # Zero only the two y-pad rows per image of each intermediate buffer: the
            # interior rows are fully overwritten before they are read, and x-padding is
            # folded into the band matrices so there are no pad columns to clear.
            for i in range(1, nconv):
                pr = s_refs[pad_idx[i]]
                m = metas[i]
                zrow = jnp.zeros((1, m['w'] * m['cin']), jnp.float32)
                for img in range(n):
                    pr[pl.ds(img * m['hpa'], 1), :] = zrow
                    pr[pl.ds(img * m['hpa'] + m['h'] + 1, 1), :] = zrow

            # -------- feature extractor: conv + bias + ReLU (+ 2x2 max-pool) in vregs --
            act_ref = in_refs[0]
            for i, m in enumerate(metas):
                h, w, hpa = m['h'], m['w'], m['hpa']
                cout, pool = m['cout'], m['pool']
                last = (i == nconv - 1)
                band = band_refs[i]
                brow = brow_refs[i][...]                       # (1, w*cout)
                nxt = None if last else s_refs[pad_idx[i + 1]]
                nxt_hpa = None if last else metas[i + 1]['hpa']

                for img in range(n):
                    base = img * hpa
                    if pool:
                        h2 = h // 2
                        # Even / odd conv output rows via stride-2 sublane loads of the
                        # padded rows; conv = 3 banded MXU matmuls per parity.
                        acc_e = jnp.dot(act_ref[pl.ds(base, h2, stride=2), :], band[0],
                                        preferred_element_type=jnp.float32)
                        acc_o = jnp.dot(act_ref[pl.ds(base + 1, h2, stride=2), :], band[0],
                                        preferred_element_type=jnp.float32)
                        for dy in (1, 2):
                            acc_e += jnp.dot(act_ref[pl.ds(base + dy, h2, stride=2), :],
                                             band[dy], preferred_element_type=jnp.float32)
                            acc_o += jnp.dot(act_ref[pl.ds(base + 1 + dy, h2, stride=2), :],
                                             band[dy], preferred_element_type=jnp.float32)
                        # Fused bias + ReLU + 2x2 max-pool entirely on values:
                        #   y-pool = even/odd max, x-pool = lane-half max (parity bands).
                        ymax = jnp.maximum(jnp.maximum(acc_e, acc_o) + brow, 0.0)
                        half = (w // 2) * cout
                        pooled = jnp.maximum(ymax[:, :half], ymax[:, half:])   # (h2, half)
                        if last:
                            feat_ref[pl.ds(img * fhA, h2), :] = pooled
                        else:
                            nxt[pl.ds(img * nxt_hpa + 1, h2), :] = pooled
                    else:
                        # Non-pooled layer: all h rows, 3 banded matmuls, one block store.
                        acc = jnp.dot(act_ref[pl.ds(base, h), :], band[0],
                                      preferred_element_type=jnp.float32)
                        for dy in (1, 2):
                            acc += jnp.dot(act_ref[pl.ds(base + dy, h), :], band[dy],
                                           preferred_element_type=jnp.float32)
                        yact = jnp.maximum(acc + brow, 0.0)
                        nxt[pl.ds(img * nxt_hpa + 1, h), :] = yact

                if not last:
                    act_ref = nxt

            # -------- classifier head: flatten folded into FC1 block matmuls -----------
            hcur = jnp.dot(feat_ref[pl.ds(0, n, stride=fhA), :], fc1_w_ref[0],
                           preferred_element_type=jnp.float32)
            for y in range(1, feat_h):
                hcur += jnp.dot(feat_ref[pl.ds(y, n, stride=fhA), :], fc1_w_ref[y],
                                preferred_element_type=jnp.float32)
            hcur = hcur + fc1_b_ref[...]
            if nfc_rest > 0:
                hcur = jnp.maximum(hcur, 0.0)
            for j in range(nfc_rest):
                hcur = (jnp.dot(hcur, rest_w[j][...], preferred_element_type=jnp.float32)
                        + rest_b[j][...])
                if j < nfc_rest - 1:
                    hcur = jnp.maximum(hcur, 0.0)
            out_ref[...] = hcur.astype(out_ref.dtype)

        # VMEM budget from the real footprint (don't assume a blanket limit: v7x has
        # only 64 MiB physical).  2x headroom + 1 MiB slack, clamped to [4, 48] MiB.
        io_bytes = sum(int(np.prod(a.shape)) * a.dtype.itemsize for a in inputs)
        io_bytes += n * self.out_classes * 4
        vmem_limit = int(2 * (io_bytes + scratch_bytes)) + (1 << 20)
        vmem_limit = max(4 << 20, min(vmem_limit, 48 << 20))

        return pl.pallas_call(
            kernel,
            out_shape=jax.ShapeDtypeStruct((n, self.out_classes), jnp.float32),
            in_specs=[_vmem_spec()] * num_in,
            out_specs=_vmem_spec(),
            scratch_shapes=scratch,
            compiler_params=pltpu.CompilerParams(vmem_limit_bytes=vmem_limit),
        )(*inputs)

    # ------------------------------------------------------------ pure-JAX reference
    def forward_reference(self, x_nchw):
        x = jnp.transpose(x_nchw, (0, 2, 3, 1))
        hi = jax.lax.Precision.HIGHEST
        for (W, B), m in zip(self.conv_params, self.layer_meta):
            nb, h, w, cin = x.shape
            xp = jnp.pad(x, ((0, 0), (1, 1), (1, 1), (0, 0)))
            patches = jnp.stack(
                [xp[:, dy:dy + h, dx:dx + w, :] for dy in range(3) for dx in range(3)],
                axis=3)
            y = jnp.einsum('nhwkc,kco->nhwo', patches, W.reshape(9, cin, -1),
                           precision=hi) + B
            x = jnp.maximum(y, 0.0)
            if m['pool']:
                x = jnp.maximum(jnp.maximum(x[:, 0::2, 0::2, :], x[:, 0::2, 1::2, :]),
                                jnp.maximum(x[:, 1::2, 0::2, :], x[:, 1::2, 1::2, :]))
        nb = x.shape[0]
        feats = jnp.transpose(x, (0, 3, 1, 2)).reshape(nb, -1)   # torch flatten order
        for W, B in self.fc_params[:-1]:
            feats = jnp.maximum(jnp.dot(feats, W, precision=hi) + B, 0.0)
        W, B = self.fc_params[-1]
        return jnp.dot(feats, W, precision=hi) + B


if __name__ == "__main__":
    key = jax.random.PRNGKey(0)
    pkey, xkey = jax.random.split(key)

    in_size = (4, 16, 16)          # (C, H, W)
    model = ConvClassifierPallas(
        in_size=in_size,
        out_classes=10,
        filters=[8, 16],
        pool_every=1,
        hidden_dims=[32],
        key=pkey,
    )

    x = jax.random.normal(xkey, (2,) + in_size, jnp.float32)   # NCHW, like PyTorch

    out = jax.jit(model.forward)(x)
    out = jax.block_until_ready(out)

    assert out.shape == (2, 10), out.shape
    assert bool(jnp.all(jnp.isfinite(out)))

    ref = model.forward_reference(x)
    assert bool(jnp.allclose(out, ref, rtol=5e-2, atol=5e-2)), "Pallas vs JAX reference mismatch"

    print("KERNEL_OK")
</pallas_src>

<mosaic_0001>
module attributes {stable_mosaic.version = 11 : i64} {
  func.func @kernel(%arg0: memref<48x64xf32, #tpu.memory_space<vmem>>, %arg1: memref<3x64x128xf32, #tpu.memory_space<vmem>>, %arg2: memref<1x128xf32, #tpu.memory_space<vmem>>, %arg3: memref<3x64x128xf32, #tpu.memory_space<vmem>>, %arg4: memref<1x128xf32, #tpu.memory_space<vmem>>, %arg5: memref<4x64x32xf32, #tpu.memory_space<vmem>>, %arg6: memref<1x32xf32, #tpu.memory_space<vmem>>, %arg7: memref<32x10xf32, #tpu.memory_space<vmem>>, %arg8: memref<1x10xf32, #tpu.memory_space<vmem>>, %arg9: memref<2x10xf32, #tpu.memory_space<vmem>>, %arg10: memref<32x64xf32, #tpu.memory_space<vmem>>, %arg11: memref<16x64xf32, #tpu.memory_space<vmem>>) attributes {dimension_semantics = [], scalar_prefetch = 0 : i64, scratch_operands = 2 : i64, tpu.core_type = #tpu.core_type<tc>} {
    %cst = arith.constant 0.000000e+00 : f32
    %0 = vector.broadcast %cst : f32 to vector<1x64xf32>
    %c0 = arith.constant 0 : index
    %c0_0 = arith.constant 0 : index
    %1 = vector.load %arg10[%c0, %c0_0] : memref<32x64xf32, #tpu.memory_space<vmem>>, vector<1x64xf32>
    tpu.vector_store %arg10[%c0, %c0_0], %0 {strides = array<i32>} : memref<32x64xf32, #tpu.memory_space<vmem>>, vector<1x64xf32>,
    %c9 = arith.constant 9 : index
    %c0_1 = arith.constant 0 : index
    %2 = vector.load %arg10[%c9, %c0_1] : memref<32x64xf32, #tpu.memory_space<vmem>>, vector<1x64xf32>
    tpu.vector_store %arg10[%c9, %c0_1], %0 {strides = array<i32>} : memref<32x64xf32, #tpu.memory_space<vmem>>, vector<1x64xf32>,
    %c16 = arith.constant 16 : index
    %c0_2 = arith.constant 0 : index
    %3 = vector.load %arg10[%c16, %c0_2] : memref<32x64xf32, #tpu.memory_space<vmem>>, vector<1x64xf32>
    tpu.vector_store %arg10[%c16, %c0_2], %0 {strides = array<i32>} : memref<32x64xf32, #tpu.memory_space<vmem>>, vector<1x64xf32>,
    %c25 = arith.constant 25 : index
    %c0_3 = arith.constant 0 : index
    %4 = vector.load %arg10[%c25, %c0_3] : memref<32x64xf32, #tpu.memory_space<vmem>>, vector<1x64xf32>
    tpu.vector_store %arg10[%c25, %c0_3], %0 {strides = array<i32>} : memref<32x64xf32, #tpu.memory_space<vmem>>, vector<1x64xf32>,
    %c0_4 = arith.constant 0 : index
    %c0_5 = arith.constant 0 : index
    %5 = vector.load %arg2[%c0_4, %c0_5] : memref<1x128xf32, #tpu.memory_space<vmem>>, vector<1x128xf32>
    %c0_6 = arith.constant 0 : index
    %c0_7 = arith.constant 0 : index
    %6 = tpu.strided_load %arg0[%c0_6, %c0_7] {strides = array<i32: 2, 1>} : memref<48x64xf32, #tpu.memory_space<vmem>>, vector<8x64xf32>
    %c0_8 = arith.constant 0 : index
    %c0_9 = arith.constant 0 : index
    %c0_10 = arith.constant 0 : index
    %7 = vector.load %arg1[%c0_8, %c0_9, %c0_10] : memref<3x64x128xf32, #tpu.memory_space<vmem>>, vector<1x64x128xf32>
    %8 = vector.shape_cast %7 : vector<1x64x128xf32> to vector<64x128xf32>
    %cst_11 = arith.constant dense<0.000000e+00> : vector<8x128xf32>
    %9 = tpu.matmul %6, %8, %cst_11 {dimension_numbers = #tpu.dot_dimension_numbers<[1], [0], [0], [1], [0, 0, 1, 1], [], []>} : vector<8x64xf32>, vector<64x128xf32>, vector<8x128xf32> -> vector<8x128xf32>
    %c1 = arith.constant 1 : index
    %c0_12 = arith.constant 0 : index
    %10 = tpu.strided_load %arg0[%c1, %c0_12] {strides = array<i32: 2, 1>} : memref<48x64xf32, #tpu.memory_space<vmem>>, vector<8x64xf32>
    %c0_13 = arith.constant 0 : index
    %c0_14 = arith.constant 0 : index
    %c0_15 = arith.constant 0 : index
    %11 = vector.load %arg1[%c0_13, %c0_14, %c0_15] : memref<3x64x128xf32, #tpu.memory_space<vmem>>, vector<1x64x128xf32>
    %12 = vector.shape_cast %11 : vector<1x64x128xf32> to vector<64x128xf32>
    %cst_16 = arith.constant dense<0.000000e+00> : vector<8x128xf32>
    %13 = tpu.matmul %10, %12, %cst_16 {dimension_numbers = #tpu.dot_dimension_numbers<[1], [0], [0], [1], [0, 0, 1, 1], [], []>} : vector<8x64xf32>, vector<64x128xf32>, vector<8x128xf32> -> vector<8x128xf32>
    %c1_17 = arith.constant 1 : index
    %c0_18 = arith.constant 0 : index
    %14 = tpu.strided_load %arg0[%c1_17, %c0_18] {strides = array<i32: 2, 1>} : memref<48x64xf32, #tpu.memory_space<vmem>>, vector<8x64xf32>
    %c1_19 = arith.constant 1 : index
    %c0_20 = arith.constant 0 : index
    %c0_21 = arith.constant 0 : index
    %15 = vector.load %arg1[%c1_19, %c0_20, %c0_21] : memref<3x64x128xf32, #tpu.memory_space<vmem>>, vector<1x64x128xf32>
    %16 = vector.shape_cast %15 : vector<1x64x128xf32> to vector<64x128xf32>
    %cst_22 = arith.constant dense<0.000000e+00> : vector<8x128xf32>
    %17 = tpu.matmul %14, %16, %cst_22 {dimension_numbers = #tpu.dot_dimension_numbers<[1], [0], [0], [1], [0, 0, 1, 1], [], []>} : vector<8x64xf32>, vector<64x128xf32>, vector<8x128xf32> -> vector<8x128xf32>
    %18 = arith.addf %9, %17 : vector<8x128xf32>
    %c2 = arith.constant 2 : index
    %c0_23 = arith.constant 0 : index
    %19 = tpu.strided_load %arg0[%c2, %c0_23] {strides = array<i32: 2, 1>} : memref<48x64xf32, #tpu.memory_space<vmem>>, vector<8x64xf32>
    %c1_24 = arith.constant 1 : index
    %c0_25 = arith.constant 0 : index
    %c0_26 = arith.constant 0 : index
    %20 = vector.load %arg1[%c1_24, %c0_25, %c0_26] : memref<3x64x128xf32, #tpu.memory_space<vmem>>, vector<1x64x128xf32>
    %21 = vector.shape_cast %20 : vector<1x64x128xf32> to vector<64x128xf32>
    %cst_27 = arith.constant dense<0.000000e+00> : vector<8x128xf32>
    %22 = tpu.matmul %19, %21, %cst_27 {dimension_numbers = #tpu.dot_dimension_numbers<[1], [0], [0], [1], [0, 0, 1, 1], [], []>} : vector<8x64xf32>, vector<64x128xf32>, vector<8x128xf32> -> vector<8x128xf32>
    %23 = arith.addf %13, %22 : vector<8x128xf32>
    %c2_28 = arith.constant 2 : index
    %c0_29 = arith.constant 0 : index
    %24 = tpu.strided_load %arg0[%c2_28, %c0_29] {strides = array<i32: 2, 1>} : memref<48x64xf32, #tpu.memory_space<vmem>>, vector<8x64xf32>
    %c2_30 = arith.constant 2 : index
    %c0_31 = arith.constant 0 : index
    %c0_32 = arith.constant 0 : index
    %25 = vector.load %arg1[%c2_30, %c0_31, %c0_32] : memref<3x64x128xf32, #tpu.memory_space<vmem>>, vector<1x64x128xf32>
    %26 = vector.shape_cast %25 : vector<1x64x128xf32> to vector<64x128xf32>
    %cst_33 = arith.constant dense<0.000000e+00> : vector<8x128xf32>
    %27 = tpu.matmul %24, %26, %cst_33 {dimension_numbers = #tpu.dot_dimension_numbers<[1], [0], [0], [1], [0, 0, 1, 1], [], []>} : vector<8x64xf32>, vector<64x128xf32>, vector<8x128xf32> -> vector<8x128xf32>
    %28 = arith.addf %18, %27 : vector<8x128xf32>
    %c3 = arith.constant 3 : index
    %c0_34 = arith.constant 0 : index
    %29 = tpu.strided_load %arg0[%c3, %c0_34] {strides = array<i32: 2, 1>} : memref<48x64xf32, #tpu.memory_space<vmem>>, vector<8x64xf32>
    %c2_35 = arith.constant 2 : index
    %c0_36 = arith.constant 0 : index
    %c0_37 = arith.constant 0 : index
    %30 = vector.load %arg1[%c2_35, %c0_36, %c0_37] : memref<3x64x128xf32, #tpu.memory_space<vmem>>, vector<1x64x128xf32>
    %31 = vector.shape_cast %30 : vector<1x64x128xf32> to vector<64x128xf32>
    %cst_38 = arith.constant dense<0.000000e+00> : vector<8x128xf32>
    %32 = tpu.matmul %29, %31, %cst_38 {dimension_numbers = #tpu.dot_dimension_numbers<[1], [0], [0], [1], [0, 0, 1, 1], [], []>} : vector<8x64xf32>, vector<64x128xf32>, vector<8x128xf32> -> vector<8x128xf32>
    %33 = arith.addf %23, %32 : vector<8x128xf32>
    %34 = arith.maximumf %28, %33 : vector<8x128xf32>
    %35 = vector.broadcast %5 : vector<1x128xf32> to vector<8x128xf32>
    %36 = arith.addf %34, %35 : vector<8x128xf32>
    %cst_39 = arith.constant 0.000000e+00 : f32
    %37 = vector.broadcast %cst_39 : f32 to vector<8x128xf32>
    %38 = arith.maximumf %36, %37 : vector<8x128xf32>
    %39 = vector.extract_strided_slice %38 {offsets = [0, 0], sizes = [8, 64], strides = [1, 1]} : vector<8x128xf32> to vector<8x64xf32>
    %40 = vector.extract_strided_slice %38 {offsets = [0, 64], sizes = [8, 64], strides = [1, 1]} : vector<8x128xf32> to vector<8x64xf32>
    %41 = arith.maximumf %39, %40 : vector<8x64xf32>
    %c1_40 = arith.constant 1 : index
    %c0_41 = arith.constant 0 : index
    %42 = vector.load %arg10[%c1_40, %c0_41] : memref<32x64xf32, #tpu.memory_space<vmem>>, vector<8x64xf32>
    tpu.vector_store %arg10[%c1_40, %c0_41], %41 {strides = array<i32>} : memref<32x64xf32, #tpu.memory_space<vmem>>, vector<8x64xf32>,
    %c24 = arith.constant 24 : index
    %c0_42 = arith.constant 0 : index
    %43 = tpu.strided_load %arg0[%c24, %c0_42] {strides = array<i32: 2, 1>} : memref<48x64xf32, #tpu.memory_space<vmem>>, vector<8x64xf32>
    %c0_43 = arith.constant 0 : index
    %c0_44 = arith.constant 0 : index
    %c0_45 = arith.constant 0 : index
    %44 = vector.load %arg1[%c0_43, %c0_44, %c0_45] : memref<3x64x128xf32, #tpu.memory_space<vmem>>, vector<1x64x128xf32>
    %45 = vector.shape_cast %44 : vector<1x64x128xf32> to vector<64x128xf32>
    %cst_46 = arith.constant dense<0.000000e+00> : vector<8x128xf32>
    %46 = tpu.matmul %43, %45, %cst_46 {dimension_numbers = #tpu.dot_dimension_numbers<[1], [0], [0], [1], [0, 0, 1, 1], [], []>} : vector<8x64xf32>, vector<64x128xf32>, vector<8x128xf32> -> vector<8x128xf32>
    %c25_47 = arith.constant 25 : index
    %c0_48 = arith.constant 0 : index
    %47 = tpu.strided_load %arg0[%c25_47, %c0_48] {strides = array<i32: 2, 1>} : memref<48x64xf32, #tpu.memory_space<vmem>>, vector<8x64xf32>
    %c0_49 = arith.constant 0 : index
    %c0_50 = arith.constant 0 : index
    %c0_51 = arith.constant 0 : index
    %48 = vector.load %arg1[%c0_49, %c0_50, %c0_51] : memref<3x64x128xf32, #tpu.memory_space<vmem>>, vector<1x64x128xf32>
    %49 = vector.shape_cast %48 : vector<1x64x128xf32> to vector<64x128xf32>
    %cst_52 = arith.constant dense<0.000000e+00> : vector<8x128xf32>
    %50 = tpu.matmul %47, %49, %cst_52 {dimension_numbers = #tpu.dot_dimension_numbers<[1], [0], [0], [1], [0, 0, 1, 1], [], []>} : vector<8x64xf32>, vector<64x128xf32>, vector<8x128xf32> -> vector<8x128xf32>
    %c25_53 = arith.constant 25 : index
    %c0_54 = arith.constant 0 : index
    %51 = tpu.strided_load %arg0[%c25_53, %c0_54] {strides = array<i32: 2, 1>} : memref<48x64xf32, #tpu.memory_space<vmem>>, vector<8x64xf32>
    %c1_55 = arith.constant 1 : index
    %c0_56 = arith.constant 0 : index
    %c0_57 = arith.constant 0 : index
    %52 = vector.load %arg1[%c1_55, %c0_56, %c0_57] : memref<3x64x128xf32, #tpu.memory_space<vmem>>, vector<1x64x128xf32>
    %53 = vector.shape_cast %52 : vector<1x64x128xf32> to vector<64x128xf32>
    %cst_58 = arith.constant dense<0.000000e+00> : vector<8x128xf32>
    %54 = tpu.matmul %51, %53, %cst_58 {dimension_numbers = #tpu.dot_dimension_numbers<[1], [0], [0], [1], [0, 0, 1, 1], [], []>} : vector<8x64xf32>, vector<64x128xf32>, vector<8x128xf32> -> vector<8x128xf32>
    %55 = arith.addf %46, %54 : vector<8x128xf32>
    %c26 = arith.constant 26 : index
    %c0_59 = arith.constant 0 : index
    %56 = tpu.strided_load %arg0[%c26, %c0_59] {strides = array<i32: 2, 1>} : memref<48x64xf32, #tpu.memory_space<vmem>>, vector<8x64xf32>
    %c1_60 = arith.constant 1 : index
    %c0_61 = arith.constant 0 : index
    %c0_62 = arith.constant 0 : index
    %57 = vector.load %arg1[%c1_60, %c0_61, %c0_62] : memref<3x64x128xf32, #tpu.memory_space<vmem>>, vector<1x64x128xf32>
    %58 = vector.shape_cast %57 : vector<1x64x128xf32> to vector<64x128xf32>
    %cst_63 = arith.constant dense<0.000000e+00> : vector<8x128xf32>
    %59 = tpu.matmul %56, %58, %cst_63 {dimension_numbers = #tpu.dot_dimension_numbers<[1], [0], [0], [1], [0, 0, 1, 1], [], []>} : vector<8x64xf32>, vector<64x128xf32>, vector<8x128xf32> -> vector<8x128xf32>
    %60 = arith.addf %50, %59 : vector<8x128xf32>
    %c26_64 = arith.constant 26 : index
    %c0_65 = arith.constant 0 : index
    %61 = tpu.strided_load %arg0[%c26_64, %c0_65] {strides = array<i32: 2, 1>} : memref<48x64xf32, #tpu.memory_space<vmem>>, vector<8x64xf32>
    %c2_66 = arith.constant 2 : index
    %c0_67 = arith.constant 0 : index
    %c0_68 = arith.constant 0 : index
    %62 = vector.load %arg1[%c2_66, %c0_67, %c0_68] : memref<3x64x128xf32, #tpu.memory_space<vmem>>, vector<1x64x128xf32>
    %63 = vector.shape_cast %62 : vector<1x64x128xf32> to vector<64x128xf32>
    %cst_69 = arith.constant dense<0.000000e+00> : vector<8x128xf32>
    %64 = tpu.matmul %61, %63, %cst_69 {dimension_numbers = #tpu.dot_dimension_numbers<[1], [0], [0], [1], [0, 0, 1, 1], [], []>} : vector<8x64xf32>, vector<64x128xf32>, vector<8x128xf32> -> vector<8x128xf32>
    %65 = arith.addf %55, %64 : vector<8x128xf32>
    %c27 = arith.constant 27 : index
    %c0_70 = arith.constant 0 : index
    %66 = tpu.strided_load %arg0[%c27, %c0_70] {strides = array<i32: 2, 1>} : memref<48x64xf32, #tpu.memory_space<vmem>>, vector<8x64xf32>
    %c2_71 = arith.constant 2 : index
    %c0_72 = arith.constant 0 : index
    %c0_73 = arith.constant 0 : index
    %67 = vector.load %arg1[%c2_71, %c0_72, %c0_73] : memref<3x64x128xf32, #tpu.memory_space<vmem>>, vector<1x64x128xf32>
    %68 = vector.shape_cast %67 : vector<1x64x128xf32> to vector<64x128xf32>
    %cst_74 = arith.constant dense<0.000000e+00> : vector<8x128xf32>
    %69 = tpu.matmul %66, %68, %cst_74 {dimension_numbers = #tpu.dot_dimension_numbers<[1], [0], [0], [1], [0, 0, 1, 1], [], []>} : vector<8x64xf32>, vector<64x128xf32>, vector<8x128xf32> -> vector<8x128xf32>
    %70 = arith.addf %60, %69 : vector<8x128xf32>
    %71 = arith.maximumf %65, %70 : vector<8x128xf32>
    %72 = vector.broadcast %5 : vector<1x128xf32> to vector<8x128xf32>
    %73 = arith.addf %71, %72 : vector<8x128xf32>
    %cst_75 = arith.constant 0.000000e+00 : f32
    %74 = vector.broadcast %cst_75 : f32 to vector<8x128xf32>
    %75 = arith.maximumf %73, %74 : vector<8x128xf32>
    %76 = vector.extract_strided_slice %75 {offsets = [0, 0], sizes = [8, 64], strides = [1, 1]} : vector<8x128xf32> to vector<8x64xf32>
    %77 = vector.extract_strided_slice %75 {offsets = [0, 64], sizes = [8, 64], strides = [1, 1]} : vector<8x128xf32> to vector<8x64xf32>
    %78 = arith.maximumf %76, %77 : vector<8x64xf32>
    %c17 = arith.constant 17 : index
    %c0_76 = arith.constant 0 : index
    %79 = vector.load %arg10[%c17, %c0_76] : memref<32x64xf32, #tpu.memory_space<vmem>>, vector<8x64xf32>
    tpu.vector_store %arg10[%c17, %c0_76], %78 {strides = array<i32>} : memref<32x64xf32, #tpu.memory_space<vmem>>, vector<8x64xf32>,
    %c0_77 = arith.constant 0 : index
    %c0_78 = arith.constant 0 : index
    %80 = vector.load %arg4[%c0_77, %c0_78] : memref<1x128xf32, #tpu.memory_space<vmem>>, vector<1x128xf32>
    %c0_79 = arith.constant 0 : index
    %c0_80 = arith.constant 0 : index
    %81 = tpu.strided_load %arg10[%c0_79, %c0_80] {strides = array<i32: 2, 1>} : memref<32x64xf32, #tpu.memory_space<vmem>>, vector<4x64xf32>
    %c0_81 = arith.constant 0 : index
    %c0_82 = arith.constant 0 : index
    %c0_83 = arith.constant 0 : index
    %82 = vector.load %arg3[%c0_81, %c0_82, %c0_83] : memref<3x64x128xf32, #tpu.memory_space<vmem>>, vector<1x64x128xf32>
    %83 = vector.shape_cast %82 : vector<1x64x128xf32> to vector<64x128xf32>
    %cst_84 = arith.constant dense<0.000000e+00> : vector<4x128xf32>
    %84 = tpu.matmul %81, %83, %cst_84 {dimension_numbers = #tpu.dot_dimension_numbers<[1], [0], [0], [1], [0, 0, 1, 1], [], []>} : vector<4x64xf32>, vector<64x128xf32>, vector<4x128xf32> -> vector<4x128xf32>
    %c1_85 = arith.constant 1 : index
    %c0_86 = arith.constant 0 : index
    %85 = tpu.strided_load %arg10[%c1_85, %c0_86] {strides = array<i32: 2, 1>} : memref<32x64xf32, #tpu.memory_space<vmem>>, vector<4x64xf32>
    %c0_87 = arith.constant 0 : index
    %c0_88 = arith.constant 0 : index
    %c0_89 = arith.constant 0 : index
    %86 = vector.load %arg3[%c0_87, %c0_88, %c0_89] : memref<3x64x128xf32, #tpu.memory_space<vmem>>, vector<1x64x128xf32>
    %87 = vector.shape_cast %86 : vector<1x64x128xf32> to vector<64x128xf32>
    %cst_90 = arith.constant dense<0.000000e+00> : vector<4x128xf32>
    %88 = tpu.matmul %85, %87, %cst_90 {dimension_numbers = #tpu.dot_dimension_numbers<[1], [0], [0], [1], [0, 0, 1, 1], [], []>} : vector<4x64xf32>, vector<64x128xf32>, vector<4x128xf32> -> vector<4x128xf32>
    %c1_91 = arith.constant 1 : index
    %c0_92 = arith.constant 0 : index
    %89 = tpu.strided_load %arg10[%c1_91, %c0_92] {strides = array<i32: 2, 1>} : memref<32x64xf32, #tpu.memory_space<vmem>>, vector<4x64xf32>
    %c1_93 = arith.constant 1 : index
    %c0_94 = arith.constant 0 : index
    %c0_95 = arith.constant 0 : index
    %90 = vector.load %arg3[%c1_93, %c0_94, %c0_95] : memref<3x64x128xf32, #tpu.memory_space<vmem>>, vector<1x64x128xf32>
    %91 = vector.shape_cast %90 : vector<1x64x128xf32> to vector<64x128xf32>
    %cst_96 = arith.constant dense<0.000000e+00> : vector<4x128xf32>
    %92 = tpu.matmul %89, %91, %cst_96 {dimension_numbers = #tpu.dot_dimension_numbers<[1], [0], [0], [1], [0, 0, 1, 1], [], []>} : vector<4x64xf32>, vector<64x128xf32>, vector<4x128xf32> -> vector<4x128xf32>
    %93 = arith.addf %84, %92 : vector<4x128xf32>
    %c2_97 = arith.constant 2 : index
    %c0_98 = arith.constant 0 : index
    %94 = tpu.strided_load %arg10[%c2_97, %c0_98] {strides = array<i32: 2, 1>} : memref<32x64xf32, #tpu.memory_space<vmem>>, vector<4x64xf32>
    %c1_99 = arith.constant 1 : index
    %c0_100 = arith.constant 0 : index
    %c0_101 = arith.constant 0 : index
    %95 = vector.load %arg3[%c1_99, %c0_100, %c0_101] : memref<3x64x128xf32, #tpu.memory_space<vmem>>, vector<1x64x128xf32>
    %96 = vector.shape_cast %95 : vector<1x64x128xf32> to vector<64x128xf32>
    %cst_102 = arith.constant dense<0.000000e+00> : vector<4x128xf32>
    %97 = tpu.matmul %94, %96, %cst_102 {dimension_numbers = #tpu.dot_dimension_numbers<[1], [0], [0], [1], [0, 0, 1, 1], [], []>} : vector<4x64xf32>, vector<64x128xf32>, vector<4x128xf32> -> vector<4x128xf32>
    %98 = arith.addf %88, %97 : vector<4x128xf32>
    %c2_103 = arith.constant 2 : index
    %c0_104 = arith.constant 0 : index
    %99 = tpu.strided_load %arg10[%c2_103, %c0_104] {strides = array<i32: 2, 1>} : memref<32x64xf32, #tpu.memory_space<vmem>>, vector<4x64xf32>
    %c2_105 = arith.constant 2 : index
    %c0_106 = arith.constant 0 : index
    %c0_107 = arith.constant 0 : index
    %100 = vector.load %arg3[%c2_105, %c0_106, %c0_107] : memref<3x64x128xf32, #tpu.memory_space<vmem>>, vector<1x64x128xf32>
    %101 = vector.shape_cast %100 : vector<1x64x128xf32> to vector<64x128xf32>
    %cst_108 = arith.constant dense<0.000000e+00> : vector<4x128xf32>
    %102 = tpu.matmul %99, %101, %cst_108 {dimension_numbers = #tpu.dot_dimension_numbers<[1], [0], [0], [1], [0, 0, 1, 1], [], []>} : vector<4x64xf32>, vector<64x128xf32>, vector<4x128xf32> -> vector<4x128xf32>
    %103 = arith.addf %93, %102 : vector<4x128xf32>
    %c3_109 = arith.constant 3 : index
    %c0_110 = arith.constant 0 : index
    %104 = tpu.strided_load %arg10[%c3_109, %c0_110] {strides = array<i32: 2, 1>} : memref<32x64xf32, #tpu.memory_space<vmem>>, vector<4x64xf32>
    %c2_111 = arith.constant 2 : index
    %c0_112 = arith.constant 0 : index
    %c0_113 = arith.constant 0 : index
    %105 = vector.load %arg3[%c2_111, %c0_112, %c0_113] : memref<3x64x128xf32, #tpu.memory_space<vmem>>, vector<1x64x128xf32>
    %106 = vector.shape_cast %105 : vector<1x64x128xf32> to vector<64x128xf32>
    %cst_114 = arith.constant dense<0.000000e+00> : vector<4x128xf32>
    %107 = tpu.matmul %104, %106, %cst_114 {dimension_numbers = #tpu.dot_dimension_numbers<[1], [0], [0], [1], [0, 0, 1, 1], [], []>} : vector<4x64xf32>, vector<64x128xf32>, vector<4x128xf32> -> vector<4x128xf32>
    %108 = arith.addf %98, %107 : vector<4x128xf32>
    %109 = arith.maximumf %103, %108 : vector<4x128xf32>
    %110 = vector.broadcast %80 : vector<1x128xf32> to vector<4x128xf32>
    %111 = arith.addf %109, %110 : vector<4x128xf32>
    %cst_115 = arith.constant 0.000000e+00 : f32
    %112 = vector.broadcast %cst_115 : f32 to vector<4x128xf32>
    %113 = arith.maximumf %111, %112 : vector<4x128xf32>
    %114 = vector.extract_strided_slice %113 {offsets = [0, 0], sizes = [4, 64], strides = [1, 1]} : vector<4x128xf32> to vector<4x64xf32>
    %115 = vector.extract_strided_slice %113 {offsets = [0, 64], sizes = [4, 64], strides = [1, 1]} : vector<4x128xf32> to vector<4x64xf32>
    %116 = arith.maximumf %114, %115 : vector<4x64xf32>
    %c0_116 = arith.constant 0 : index
    %c0_117 = arith.constant 0 : index
    %117 = vector.load %arg11[%c0_116, %c0_117] : memref<16x64xf32, #tpu.memory_space<vmem>>, vector<4x64xf32>
    tpu.vector_store %arg11[%c0_116, %c0_117], %116 {strides = array<i32>} : memref<16x64xf32, #tpu.memory_space<vmem>>, vector<4x64xf32>,
    %c16_118 = arith.constant 16 : index
    %c0_119 = arith.constant 0 : index
    %118 = tpu.strided_load %arg10[%c16_118, %c0_119] {strides = array<i32: 2, 1>} : memref<32x64xf32, #tpu.memory_space<vmem>>, vector<4x64xf32>
    %c0_120 = arith.constant 0 : index
    %c0_121 = arith.constant 0 : index
    %c0_122 = arith.constant 0 : index
    %119 = vector.load %arg3[%c0_120, %c0_121, %c0_122] : memref<3x64x128xf32, #tpu.memory_space<vmem>>, vector<1x64x128xf32>
    %120 = vector.shape_cast %119 : vector<1x64x128xf32> to vector<64x128xf32>
    %cst_123 = arith.constant dense<0.000000e+00> : vector<4x128xf32>
    %121 = tpu.matmul %118, %120, %cst_123 {dimension_numbers = #tpu.dot_dimension_numbers<[1], [0], [0], [1], [0, 0, 1, 1], [], []>} : vector<4x64xf32>, vector<64x128xf32>, vector<4x128xf32> -> vector<4x128xf32>
    %c17_124 = arith.constant 17 : index
    %c0_125 = arith.constant 0 : index
    %122 = tpu.strided_load %arg10[%c17_124, %c0_125] {strides = array<i32: 2, 1>} : memref<32x64xf32, #tpu.memory_space<vmem>>, vector<4x64xf32>
    %c0_126 = arith.constant 0 : index
    %c0_127 = arith.constant 0 : index
    %c0_128 = arith.constant 0 : index
    %123 = vector.load %arg3[%c0_126, %c0_127, %c0_128] : memref<3x64x128xf32, #tpu.memory_space<vmem>>, vector<1x64x128xf32>
    %124 = vector.shape_cast %123 : vector<1x64x128xf32> to vector<64x128xf32>
    %cst_129 = arith.constant dense<0.000000e+00> : vector<4x128xf32>
    %125 = tpu.matmul %122, %124, %cst_129 {dimension_numbers = #tpu.dot_dimension_numbers<[1], [0], [0], [1], [0, 0, 1, 1], [], []>} : vector<4x64xf32>, vector<64x128xf32>, vector<4x128xf32> -> vector<4x128xf32>
    %c17_130 = arith.constant 17 : index
    %c0_131 = arith.constant 0 : index
    %126 = tpu.strided_load %arg10[%c17_130, %c0_131] {strides = array<i32: 2, 1>} : memref<32x64xf32, #tpu.memory_space<vmem>>, vector<4x64xf32>
    %c1_132 = arith.constant 1 : index
    %c0_133 = arith.constant 0 : index
    %c0_134 = arith.constant 0 : index
    %127 = vector.load %arg3[%c1_132, %c0_133, %c0_134] : memref<3x64x128xf32, #tpu.memory_space<vmem>>, vector<1x64x128xf32>
    %128 = vector.shape_cast %127 : vector<1x64x128xf32> to vector<64x128xf32>
    %cst_135 = arith.constant dense<0.000000e+00> : vector<4x128xf32>
    %129 = tpu.matmul %126, %128, %cst_135 {dimension_numbers = #tpu.dot_dimension_numbers<[1], [0], [0], [1], [0, 0, 1, 1], [], []>} : vector<4x64xf32>, vector<64x128xf32>, vector<4x128xf32> -> vector<4x128xf32>
    %130 = arith.addf %121, %129 : vector<4x128xf32>
    %c18 = arith.constant 18 : index
    %c0_136 = arith.constant 0 : index
    %131 = tpu.strided_load %arg10[%c18, %c0_136] {strides = array<i32: 2, 1>} : memref<32x64xf32, #tpu.memory_space<vmem>>, vector<4x64xf32>
    %c1_137 = arith.constant 1 : index
    %c0_138 = arith.constant 0 : index
    %c0_139 = arith.constant 0 : index
    %132 = vector.load %arg3[%c1_137, %c0_138, %c0_139] : memref<3x64x128xf32, #tpu.memory_space<vmem>>, vector<1x64x128xf32>
    %133 = vector.shape_cast %132 : vector<1x64x128xf32> to vector<64x128xf32>
    %cst_140 = arith.constant dense<0.000000e+00> : vector<4x128xf32>
    %134 = tpu.matmul %131, %133, %cst_140 {dimension_numbers = #tpu.dot_dimension_numbers<[1], [0], [0], [1], [0, 0, 1, 1], [], []>} : vector<4x64xf32>, vector<64x128xf32>, vector<4x128xf32> -> vector<4x128xf32>
    %135 = arith.addf %125, %134 : vector<4x128xf32>
    %c18_141 = arith.constant 18 : index
    %c0_142 = arith.constant 0 : index
    %136 = tpu.strided_load %arg10[%c18_141, %c0_142] {strides = array<i32: 2, 1>} : memref<32x64xf32, #tpu.memory_space<vmem>>, vector<4x64xf32>
    %c2_143 = arith.constant 2 : index
    %c0_144 = arith.constant 0 : index
    %c0_145 = arith.constant 0 : index
    %137 = vector.load %arg3[%c2_143, %c0_144, %c0_145] : memref<3x64x128xf32, #tpu.memory_space<vmem>>, vector<1x64x128xf32>
    %138 = vector.shape_cast %137 : vector<1x64x128xf32> to vector<64x128xf32>
    %cst_146 = arith.constant dense<0.000000e+00> : vector<4x128xf32>
    %139 = tpu.matmul %136, %138, %cst_146 {dimension_numbers = #tpu.dot_dimension_numbers<[1], [0], [0], [1], [0, 0, 1, 1], [], []>} : vector<4x64xf32>, vector<64x128xf32>, vector<4x128xf32> -> vector<4x128xf32>
    %140 = arith.addf %130, %139 : vector<4x128xf32>
    %c19 = arith.constant 19 : index
    %c0_147 = arith.constant 0 : index
    %141 = tpu.strided_load %arg10[%c19, %c0_147] {strides = array<i32: 2, 1>} : memref<32x64xf32, #tpu.memory_space<vmem>>, vector<4x64xf32>
    %c2_148 = arith.constant 2 : index
    %c0_149 = arith.constant 0 : index
    %c0_150 = arith.constant 0 : index
    %142 = vector.load %arg3[%c2_148, %c0_149, %c0_150] : memref<3x64x128xf32, #tpu.memory_space<vmem>>, vector<1x64x128xf32>
    %143 = vector.shape_cast %142 : vector<1x64x128xf32> to vector<64x128xf32>
    %cst_151 = arith.constant dense<0.000000e+00> : vector<4x128xf32>
    %144 = tpu.matmul %141, %143, %cst_151 {dimension_numbers = #tpu.dot_dimension_numbers<[1], [0], [0], [1], [0, 0, 1, 1], [], []>} : vector<4x64xf32>, vector<64x128xf32>, vector<4x128xf32> -> vector<4x128xf32>
    %145 = arith.addf %135, %144 : vector<4x128xf32>
    %146 = arith.maximumf %140, %145 : vector<4x128xf32>
    %147 = vector.broadcast %80 : vector<1x128xf32> to vector<4x128xf32>
    %148 = arith.addf %146, %147 : vector<4x128xf32>
    %cst_152 = arith.constant 0.000000e+00 : f32
    %149 = vector.broadcast %cst_152 : f32 to vector<4x128xf32>
    %150 = arith.maximumf %148, %149 : vector<4x128xf32>
    %151 = vector.extract_strided_slice %150 {offsets = [0, 0], sizes = [4, 64], strides = [1, 1]} : vector<4x128xf32> to vector<4x64xf32>
    %152 = vector.extract_strided_slice %150 {offsets = [0, 64], sizes = [4, 64], strides = [1, 1]} : vector<4x128xf32> to vector<4x64xf32>
    %153 = arith.maximumf %151, %152 : vector<4x64xf32>
    %c8 = arith.constant 8 : index
    %c0_153 = arith.constant 0 : index
    %154 = vector.load %arg11[%c8, %c0_153] : memref<16x64xf32, #tpu.memory_space<vmem>>, vector<4x64xf32>
    tpu.vector_store %arg11[%c8, %c0_153], %153 {strides = array<i32>} : memref<16x64xf32, #tpu.memory_space<vmem>>, vector<4x64xf32>,
    %c0_154 = arith.constant 0 : index
    %c0_155 = arith.constant 0 : index
    %155 = tpu.strided_load %arg11[%c0_154, %c0_155] {strides = array<i32: 8, 1>} : memref<16x64xf32, #tpu.memory_space<vmem>>, vector<2x64xf32>
    %c0_156 = arith.constant 0 : index
    %c0_157 = arith.constant 0 : index
    %c0_158 = arith.constant 0 : index
    %156 = vector.load %arg5[%c0_156, %c0_157, %c0_158] : memref<4x64x32xf32, #tpu.memory_space<vmem>>, vector<1x64x32xf32>
    %157 = vector.shape_cast %156 : vector<1x64x32xf32> to vector<64x32xf32>
    %cst_159 = arith.constant dense<0.000000e+00> : vector<2x32xf32>
    %158 = tpu.matmul %155, %157, %cst_159 {dimension_numbers = #tpu.dot_dimension_numbers<[1], [0], [0], [1], [0, 0, 1, 1], [], []>} : vector<2x64xf32>, vector<64x32xf32>, vector<2x32xf32> -> vector<2x32xf32>
    %c1_160 = arith.constant 1 : index
    %c0_161 = arith.constant 0 : index
    %159 = tpu.strided_load %arg11[%c1_160, %c0_161] {strides = array<i32: 8, 1>} : memref<16x64xf32, #tpu.memory_space<vmem>>, vector<2x64xf32>
    %c1_162 = arith.constant 1 : index
    %c0_163 = arith.constant 0 : index
    %c0_164 = arith.constant 0 : index
    %160 = vector.load %arg5[%c1_162, %c0_163, %c0_164] : memref<4x64x32xf32, #tpu.memory_space<vmem>>, vector<1x64x32xf32>
    %161 = vector.shape_cast %160 : vector<1x64x32xf32> to vector<64x32xf32>
    %cst_165 = arith.constant dense<0.000000e+00> : vector<2x32xf32>
    %162 = tpu.matmul %159, %161, %cst_165 {dimension_numbers = #tpu.dot_dimension_numbers<[1], [0], [0], [1], [0, 0, 1, 1], [], []>} : vector<2x64xf32>, vector<64x32xf32>, vector<2x32xf32> -> vector<2x32xf32>
    %163 = arith.addf %158, %162 : vector<2x32xf32>
    %c2_166 = arith.constant 2 : index
    %c0_167 = arith.constant 0 : index
    %164 = tpu.strided_load %arg11[%c2_166, %c0_167] {strides = array<i32: 8, 1>} : memref<16x64xf32, #tpu.memory_space<vmem>>, vector<2x64xf32>
    %c2_168 = arith.constant 2 : index
    %c0_169 = arith.constant 0 : index
    %c0_170 = arith.constant 0 : index
    %165 = vector.load %arg5[%c2_168, %c0_169, %c0_170] : memref<4x64x32xf32, #tpu.memory_space<vmem>>, vector<1x64x32xf32>
    %166 = vector.shape_cast %165 : vector<1x64x32xf32> to vector<64x32xf32>
    %cst_171 = arith.constant dense<0.000000e+00> : vector<2x32xf32>
    %167 = tpu.matmul %164, %166, %cst_171 {dimension_numbers = #tpu.dot_dimension_numbers<[1], [0], [0], [1], [0, 0, 1, 1], [], []>} : vector<2x64xf32>, vector<64x32xf32>, vector<2x32xf32> -> vector<2x32xf32>
    %168 = arith.addf %163, %167 : vector<2x32xf32>
    %c3_172 = arith.constant 3 : index
    %c0_173 = arith.constant 0 : index
    %169 = tpu.strided_load %arg11[%c3_172, %c0_173] {strides = array<i32: 8, 1>} : memref<16x64xf32, #tpu.memory_space<vmem>>, vector<2x64xf32>
    %c3_174 = arith.constant 3 : index
    %c0_175 = arith.constant 0 : index
    %c0_176 = arith.constant 0 : index
    %170 = vector.load %arg5[%c3_174, %c0_175, %c0_176] : memref<4x64x32xf32, #tpu.memory_space<vmem>>, vector<1x64x32xf32>
    %171 = vector.shape_cast %170 : vector<1x64x32xf32> to vector<64x32xf32>
    %cst_177 = arith.constant dense<0.000000e+00> : vector<2x32xf32>
    %172 = tpu.matmul %169, %171, %cst_177 {dimension_numbers = #tpu.dot_dimension_numbers<[1], [0], [0], [1], [0, 0, 1, 1], [], []>} : vector<2x64xf32>, vector<64x32xf32>, vector<2x32xf32> -> vector<2x32xf32>
    %173 = arith.addf %168, %172 : vector<2x32xf32>
    %c0_178 = arith.constant 0 : index
    %c0_179 = arith.constant 0 : index
    %174 = vector.load %arg6[%c0_178, %c0_179] : memref<1x32xf32, #tpu.memory_space<vmem>>, vector<1x32xf32>
    %175 = vector.broadcast %174 : vector<1x32xf32> to vector<2x32xf32>
    %176 = arith.addf %173, %175 : vector<2x32xf32>
    %cst_180 = arith.constant 0.000000e+00 : f32
    %177 = vector.broadcast %cst_180 : f32 to vector<2x32xf32>
    %178 = arith.maximumf %176, %177 : vector<2x32xf32>
    %c0_181 = arith.constant 0 : index
    %c0_182 = arith.constant 0 : index
    %179 = vector.load %arg7[%c0_181, %c0_182] : memref<32x10xf32, #tpu.memory_space<vmem>>, vector<32x10xf32>
    %cst_183 = arith.constant dense<0.000000e+00> : vector<2x10xf32>
    %180 = tpu.matmul %178, %179, %cst_183 {dimension_numbers = #tpu.dot_dimension_numbers<[1], [0], [0], [1], [0, 0, 1, 1], [], []>} : vector<2x32xf32>, vector<32x10xf32>, vector<2x10xf32> -> vector<2x10xf32>
    %c0_184 = arith.constant 0 : index
    %c0_185 = arith.constant 0 : index
    %181 = vector.load %arg8[%c0_184, %c0_185] : memref<1x10xf32, #tpu.memory_space<vmem>>, vector<1x10xf32>
    %182 = vector.broadcast %181 : vector<1x10xf32> to vector<2x10xf32>
    %183 = arith.addf %180, %182 : vector<2x10xf32>
    %c0_186 = arith.constant 0 : index
    %c0_187 = arith.constant 0 : index
    %184 = vector.load %arg9[%c0_186, %c0_187] : memref<2x10xf32, #tpu.memory_space<vmem>>, vector<2x10xf32>
    tpu.vector_store %arg9[%c0_186, %c0_187], %183 {strides = array<i32>} : memref<2x10xf32, #tpu.memory_space<vmem>>, vector<2x10xf32>,
    return
  }
}

</mosaic_0001>

<bundles_post_ra>
// kernel: forward.1
= control target key start
LH: loop header
LB: loop body
LE: loop exit
PB: predicated region body
PF: predicated region fallthrough
CT: control target
= control target key end

     0   :  { %s1698_s0 = inlined_call_operand.vmem [shape: f32[48,64], index: 0, kind: input, shape index: {}]   ;;  %s1699_s1 = inlined_call_operand.vmem [shape: f32[3,64,128], index: 1, kind: input, shape index: {}]   ;;  %s1700_s2 = inlined_call_operand.vmem [shape: f32[1,128], index: 2, kind: input, shape index: {}]   ;;  %s1701_s3 = inlined_call_operand.vmem [shape: f32[3,64,128], index: 3, kind: input, shape index: {}]   ;;  %s1702_s4 = inlined_call_operand.vmem [shape: f32[1,128], index: 4, kind: input, shape index: {}]   ;;  %s1703_s5 = inlined_call_operand.vmem [shape: f32[4,64,32], index: 5, kind: input, shape index: {}]   ;;  %s1704_s6 = inlined_call_operand.vmem [shape: f32[1,32], index: 6, kind: input, shape index: {}]   ;;  %s1705_s7 = inlined_call_operand.vmem [shape: f32[32,10], index: 7, kind: input, shape index: {}]   ;;  %s1706_s8 = inlined_call_operand.vmem [shape: f32[1,10], index: 8, kind: input, shape index: {}]   ;;  %s1707_s9 = inlined_call_operand.hbm [shape: f32[2,10], index: 9, kind: output, shape index: {}]  }
   0x1   :  { %v1155_v0 = vld [vmem:[%s1699_s1 + $0x78] sm:$0xff]  ;;  %v1165_v2 = vld [vmem:[%s1699_s1 + $0x70] sm:$0xff]  ;;  %v1179_v4 = vld [vmem:[%s1699_s1 + $0x68] sm:$0xff] }
   0x2   :  { %v1160_v1 = vld [vmem:[%s1699_s1 + $0x38] sm:$0xff]  ;;  %71 = vmatpush.msra.mxu0 %v1155_v0  ;;  %v1172_v3 = vld [vmem:[%s1699_s1 + $0x30] sm:$0xff]  ;;  %119 = vmatpush.msra.mxu2 %v1155_v0  ;;  %v1184_v5 = vld [vmem:[%s1699_s1 + $0x28] sm:$0xff] }
   0x3   :  { %94 = vmatpush.msra.mxu1 %v1160_v1  ;;  %139 = vmatpush.msra.mxu3 %v1160_v1  ;;  %v1193_v6 = vld [vmem:[%s1699_s1 + $0x60] sm:$0xff]  ;;  %v1207_v8 = vld [vmem:[%s1699_s1 + $0x58] sm:$0xff]  ;;  %v1221_v10 = vld [vmem:[%s1699_s1 + $0x50] sm:$0xff] }
   0x4   :  { %72 = vmatpush.msra.mxu0 %v1165_v2  ;;  %120 = vmatpush.msra.mxu2 %v1165_v2  ;;  %v1198_v7 = vld [vmem:[%s1699_s1 + $0x20] sm:$0xff]  ;;  %v1212_v9 = vld [vmem:[%s1699_s1 + $0x18] sm:$0xff]  ;;  %v1226_v11 = vld [vmem:[%s1699_s1 + $0x10] sm:$0xff] }
   0x5   :  { %95 = vmatpush.msra.mxu1 %v1172_v3  ;;  %140 = vmatpush.msra.mxu3 %v1172_v3  ;;  %v1235_v12 = vld [vmem:[%s1699_s1 + $0x48] sm:$0xff] }
   0x6   :  { %73 = vmatpush.msra.mxu0 %v1179_v4  ;;  %121 = vmatpush.msra.mxu2 %v1179_v4  ;;  %v1240_v13 = vld [vmem:[%s1699_s1 + $0x8] sm:$0xff] }
   0x7   :  { %96 = vmatpush.msra.mxu1 %v1184_v5  ;;  %141 = vmatpush.msra.mxu3 %v1184_v5 }
   0x8   :  { %74 = vmatpush.msra.mxu0 %v1193_v6  ;;  %122 = vmatpush.msra.mxu2 %v1193_v6 }
   0x9   :  { %97 = vmatpush.msra.mxu1 %v1198_v7  ;;  %142 = vmatpush.msra.mxu3 %v1198_v7 }
   0xa   :  { %75 = vmatpush.msra.mxu0 %v1207_v8  ;;  %123 = vmatpush.msra.mxu2 %v1207_v8 }
   0xb   :  { %98 = vmatpush.msra.mxu1 %v1212_v9  ;;  %143 = vmatpush.msra.mxu3 %v1212_v9 }
   0xc   :  { %76 = vmatpush.msra.mxu0 %v1221_v10 }
   0xd   :  { %99 = vmatpush.msra.mxu1 %v1226_v11 }
   0xe   :  { %14 = vsyncpa [#allocation5], 0  ;;  %124 = vmatpush.msra.mxu2 %v1221_v10  ;;  %144 = vmatpush.msra.mxu3 %v1226_v11  ;;  %v1249_v14 = vld [vmem:[%s1699_s1 + $0x40] sm:$0xff]  ;;  %v963_v16 = vld [vmem:[%s1699_s1 + $0xb8] sm:$0xff]  ;;  %vm59_vm0 = vcmask 523264   ;;  %s1099_s10 = smov 64  }
   0xf   :  { %v1254_v15 = vld [vmem:[%s1699_s1] sm:$0xff]  ;;  %77 = vmatpush.msra.mxu0 %v1235_v12  ;;  %100 = vmatpush.msra.mxu1 %v1240_v13  ;;  %v962_v17 = vld [vmem:[%s1699_s1 + $0xb0] sm:$0xff]  ;;  %v961_v18 = vld [vmem:[%s1699_s1 + $0xa8] sm:$0xff]  ;;  %vm33_vm1 = vcmask 516096   ;;  %vm573_vm2 = vcmask 519168   ;;  %vm900_vm3 = vcmask 261120  }
  0x10   :  { %125 = vmatpush.msra.mxu2 %v1235_v12  ;;  %145 = vmatpush.msra.mxu3 %v1240_v13  ;;  %v960_v19 = vld [vmem:[%s1699_s1 + $0xa0] sm:$0xff]  ;;  %v959_v23 = vld [vmem:[%s1699_s1 + $0x98] sm:$0xff]  ;;  %v958_v24 = vld [vmem:[%s1699_s1 + $0x90] sm:$0xff]  ;;  %vm924_vm4 = vcmask 74752  }
  0x11   :  { %78 = vmatpush.msra.mxu0 %v1249_v14  ;;  %101 = vmatpush.msra.mxu1 %v1254_v15  ;;  %v942_v20 = vld [vmem:[%s1698_s0 + $0x1] ss:$2 sm:$0xff]  ;;  %v39_v21 = vld [vmem:[%s1698_s0] ss:$2 sm:$0xff]  ;;  %v1359_v38 = vld [vmem:[%s1701_s3 + $0x78] sm:$0xff] }
  0x12   :  { %126 = vmatpush.msra.mxu2 %v1249_v14  ;;  %146 = vmatpush.msra.mxu3 %v1254_v15  ;;  %v953_v22 = vld [vmem:[%s1698_s0 + $0x2] ss:$2 sm:$0xff]  ;;  %v965_v27 = vld [vmem:[%s1698_s0 + $0x3] ss:$2 sm:$0xff]  ;;  %v1364_v39 = vld [vmem:[%s1701_s3 + $0x38] sm:$0xff] }
  0x13   :  { %168 = vmatpush.msrb.mxu0 %v963_v16  ;;  %194 = vmatpush.msrb.mxu1 %v963_v16  ;;  %v957_v25 = vld [vmem:[%s1699_s1 + $0x88] sm:$0xff]  ;;  %v956_v26 = vld [vmem:[%s1699_s1 + $0x80] sm:$0xff]  ;;  %v1369_v40 = vld [vmem:[%s1701_s3 + $0x70] sm:$0xff] }
  0x14   :  { %250 = vmatpush.msrb.mxu2 %v1155_v0  ;;  %273 = vmatpush.msrb.mxu3 %v1160_v1  ;;  %v968_v28 = vld [vmem:[%s1698_s0 + $0x19] ss:$2 sm:$0xff]  ;;  %v967_v29 = vld [vmem:[%s1698_s0 + $0x18] ss:$2 sm:$0xff]  ;;  %v1376_v43 = vld [vmem:[%s1701_s3 + $0x30] sm:$0xff] }
  0x15   :  { %169 = vmatpush.msrb.mxu0 %v962_v17  ;;  %195 = vmatpush.msrb.mxu1 %v962_v17  ;;  %v979_v30 = vld [vmem:[%s1698_s0 + $0x1a] ss:$2 sm:$0xff]  ;;  %v991_v31 = vld [vmem:[%s1698_s0 + $0x1b] ss:$2 sm:$0xff]  ;;  %v1429_v56 = vld [vmem:[%s1701_s3 + $0x50] sm:$0xff] }
  0x16   :  { %251 = vmatpush.msrb.mxu2 %v1165_v2  ;;  %274 = vmatpush.msrb.mxu3 %v1172_v3  ;;  %v1069_v46 = vld [vmem:[%s1700_s2] ss:$0 sm:$0xff]  ;;  %v1384_v47 = vld [vmem:[%s1701_s3 + $0x68] sm:$0xff]  ;;  %v1414_v53 = vld [vmem:[%s1701_s3 + $0x58] sm:$0xff] }
  0x17   :  { %170 = vmatpush.msrb.mxu0 %v961_v18  ;;  %196 = vmatpush.msrb.mxu1 %v961_v18  ;;  %v1389_v48 = vld [vmem:[%s1701_s3 + $0x28] sm:$0xff]  ;;  %v1398_v50 = vld [vmem:[%s1701_s3 + $0x60] sm:$0xff]  ;;  %v1419_v54 = vld [vmem:[%s1701_s3 + $0x18] sm:$0xff] }
  0x18   :  { %252 = vmatpush.msrb.mxu2 %v1179_v4  ;;  %275 = vmatpush.msrb.mxu3 %v1184_v5  ;;  %v1403_v51 = vld [vmem:[%s1701_s3 + $0x20] sm:$0xff]  ;;  %v1434_v57 = vld [vmem:[%s1701_s3 + $0x10] sm:$0xff]  ;;  %v1446_v58 = vld [vmem:[%s1701_s3 + $0x48] sm:$0xff] }
  0x19   :  { %171 = vmatpush.msrb.mxu0 %v960_v19  ;;  %197 = vmatpush.msrb.mxu1 %v960_v19  ;;  %v1451_v59 = vld [vmem:[%s1701_s3 + $0x8] sm:$0xff] }
  0x1a   :  { %253 = vmatpush.msrb.mxu2 %v1193_v6  ;;  %276 = vmatpush.msrb.mxu3 %v1198_v7 }
  0x1b   :  { %951 = vmatmul.msk.f32.vlgmr.msra.gmra.mxu0 %vm59_vm0, %v942_v20  ;;  %952 = vmatmul.msk.f32.vlgmr.msra.gmra.mxu1 %vm59_vm0, %v39_v21 }
  0x1c   :  { %954 = vmatmul.msk.f32.vlgmr.msra.gmra.mxu2 %vm59_vm0, %v953_v22  ;;  %955 = vmatmul.msk.f32.vlgmr.msra.gmra.mxu3 %vm59_vm0, %v942_v20 }
  0x1d   :  { %172 = vmatpush.msrb.mxu0 %v959_v23  ;;  %198 = vmatpush.msrb.mxu1 %v959_v23 }
  0x1e   :  { %254 = vmatpush.msrb.mxu2 %v1207_v8  ;;  %277 = vmatpush.msrb.mxu3 %v1212_v9 }
  0x1f   :  { %173 = vmatpush.msrb.mxu0 %v958_v24  ;;  %199 = vmatpush.msrb.mxu1 %v958_v24 }
  0x20   :  { %255 = vmatpush.msrb.mxu2 %v1221_v10  ;;  %278 = vmatpush.msrb.mxu3 %v1226_v11 }
  0x21   :  { %174 = vmatpush.msrb.mxu0 %v957_v25  ;;  %200 = vmatpush.msrb.mxu1 %v957_v25 }
  0x22   :  { %256 = vmatpush.msrb.mxu2 %v1235_v12  ;;  %279 = vmatpush.msrb.mxu3 %v1240_v13 }
  0x23   :  { %175 = vmatpush.msrb.mxu0 %v956_v26  ;;  %201 = vmatpush.msrb.mxu1 %v956_v26 }
  0x24   :  { %257 = vmatpush.msrb.mxu2 %v1249_v14  ;;  %280 = vmatpush.msrb.mxu3 %v1254_v15 }
  0x25   :  { %964 = vmatmul.msk.f32.vlgmr.msrb.gmra.mxu0 %vm59_vm0, %v953_v22  ;;  %966 = vmatmul.msk.f32.vlgmr.msrb.gmra.mxu1 %vm59_vm0, %v965_v27 }
  0x26   :  { %346 = vmatpush.msra.mxu2 %v963_v16  ;;  %372 = vmatpush.msra.mxu3 %v963_v16  ;;  %v1008_v16 = vld [vmem:[%s1701_s3 + $0x98] sm:$0xff] }
  0x27   :  { %298 = vmatpush.msra.mxu0 %v1155_v0  ;;  %318 = vmatpush.msra.mxu1 %v1160_v1 }
  0x28   :  { %347 = vmatpush.msra.mxu2 %v962_v17  ;;  %373 = vmatpush.msra.mxu3 %v962_v17  ;;  %v1007_v17 = vld [vmem:[%s1701_s3 + $0x90] sm:$0xff] }
  0x29   :  { %299 = vmatpush.msra.mxu0 %v1165_v2  ;;  %319 = vmatpush.msra.mxu1 %v1172_v3 }
  0x2a   :  { %348 = vmatpush.msra.mxu2 %v961_v18  ;;  %374 = vmatpush.msra.mxu3 %v961_v18  ;;  %v1006_v18 = vld [vmem:[%s1701_s3 + $0x88] sm:$0xff] }
  0x2b   :  { %977 = vmatmul.msk.f32.vlgmr.msrb.gmra.mxu2 %vm59_vm0, %v968_v28  ;;  %978 = vmatmul.msk.f32.vlgmr.msrb.gmra.mxu3 %vm59_vm0, %v967_v29 }
  0x2c   :  { %349 = vmatpush.msra.mxu2 %v960_v19  ;;  %375 = vmatpush.msra.mxu3 %v960_v19  ;;  %v1005_v19 = vld [vmem:[%s1701_s3 + $0x80] sm:$0xff] }
  0x2d   :  { %300 = vmatpush.msra.mxu0 %v1179_v4  ;;  %320 = vmatpush.msra.mxu1 %v1184_v5 }
  0x2e   :  { %350 = vmatpush.msra.mxu2 %v959_v23  ;;  %376 = vmatpush.msra.mxu3 %v959_v23 }
  0x2f   :  { %301 = vmatpush.msra.mxu0 %v1193_v6  ;;  %321 = vmatpush.msra.mxu1 %v1198_v7 }
  0x30   :  { %351 = vmatpush.msra.mxu2 %v958_v24  ;;  %377 = vmatpush.msra.mxu3 %v958_v24 }
  0x31   :  { %302 = vmatpush.msra.mxu0 %v1207_v8  ;;  %322 = vmatpush.msra.mxu1 %v1212_v9  ;;  %v1472_v9 = vld [vmem:[%s1701_s3 + $0x40] sm:$0xff] }
  0x32   :  { %352 = vmatpush.msra.mxu2 %v957_v25  ;;  %378 = vmatpush.msra.mxu3 %v957_v25 }
  0x33   :  { %303 = vmatpush.msra.mxu0 %v1221_v10  ;;  %323 = vmatpush.msra.mxu1 %v1226_v11  ;;  %v1477_v10 = vld [vmem:[%s1701_s3] sm:$0xff]  ;;  %v1012_v11 = vld [vmem:[%s1701_s3 + $0xb8] sm:$0xff] }
  0x34   :  { %353 = vmatpush.msra.mxu2 %v956_v26  ;;  %379 = vmatpush.msra.mxu3 %v956_v26 }
  0x35   :  { %990 = vmatmul.msk.f32.vlgmr.msra.gmra.mxu2 %vm59_vm0, %v979_v30  ;;  %992 = vmatmul.msk.f32.vlgmr.msra.gmra.mxu3 %vm59_vm0, %v991_v31 }
  0x36   :  { %304 = vmatpush.msra.mxu0 %v1235_v12  ;;  %324 = vmatpush.msra.mxu1 %v1240_v13  ;;  %v1011_v12 = vld [vmem:[%s1701_s3 + $0xb0] sm:$0xff]  ;;  %v1490_v13 = vld [vmem:[%s1701_s3 + $0xa8] sm:$0xff] }
  0x37   :  { %474 = vmatpush.msrb.mxu2 %v1359_v38  ;;  %494 = vmatpush.msrb.mxu3 %v1364_v39 }
  0x38   :  { %305 = vmatpush.msra.mxu0 %v1249_v14  ;;  %325 = vmatpush.msra.mxu1 %v1254_v15  ;;  %v1100_v14 = vmov 0.0   ;;  %v1009_v15 = vld [vmem:[%s1701_s3 + $0xa0] sm:$0xff] }
  0x39   :  { %980 = vmatmul.msk.f32.vlgmr.msra.gmra.mxu0 %vm59_vm0, %v979_v30  ;;  %981 = vmatmul.msk.f32.vlgmr.msra.gmra.mxu1 %vm59_vm0, %v968_v28  ;;  %34 = vst.msk [vmem:[#allocation2] sm:$0x1] %vm33_vm1, %v1100_v14 }
  0x3a   :  { %426 = vmatpush.msrb.mxu0 %v1359_v38  ;;  %449 = vmatpush.msrb.mxu1 %v1364_v39  ;;  %35 = vst.msk [vmem:[#allocation2 + $0x9] sm:$0x1] %vm33_vm1, %v1100_v14 }
  0x3b   :  { %475 = vmatpush.msrb.mxu2 %v1369_v40  ;;  %495 = vmatpush.msrb.mxu3 %v1376_v43  ;;  %36 = vst.msk [vmem:[#allocation2 + $0x10] sm:$0x1] %vm33_vm1, %v1100_v14 }
  0x3c   :  { %427 = vmatpush.msrb.mxu0 %v1369_v40  ;;  %450 = vmatpush.msrb.mxu1 %v1376_v43  ;;  %37 = vst.msk [vmem:[#allocation2 + $0x19] sm:$0x1] %vm33_vm1, %v1100_v14  ;;  %v1059_v14 = vld [vmem:[%s1703_s5 + $0xd8] sm:$0xff] }
  0x3d   :  { %476 = vmatpush.msrb.mxu2 %v1384_v47  ;;  %496 = vmatpush.msrb.mxu3 %v1389_v48 }
  0x3e   :  { %428 = vmatpush.msrb.mxu0 %v1384_v47  ;;  %451 = vmatpush.msrb.mxu1 %v1389_v48 }
  0x3f   :  { %477 = vmatpush.msrb.mxu2 %v1398_v50  ;;  %497 = vmatpush.msrb.mxu3 %v1403_v51 }
  0x40   :  { %429 = vmatpush.msrb.mxu0 %v1398_v50  ;;  %452 = vmatpush.msrb.mxu1 %v1403_v51 }
  0x41   :  { %478 = vmatpush.msrb.mxu2 %v1414_v53  ;;  %498 = vmatpush.msrb.mxu3 %v1419_v54 }
  0x42   :  { %430 = vmatpush.msrb.mxu0 %v1414_v53  ;;  %453 = vmatpush.msrb.mxu1 %v1419_v54 }
  0x43   :  { %479 = vmatpush.msrb.mxu2 %v1429_v56  ;;  %499 = vmatpush.msrb.mxu3 %v1434_v57 }
  0x44   :  { %431 = vmatpush.msrb.mxu0 %v1429_v56  ;;  %454 = vmatpush.msrb.mxu1 %v1434_v57 }
  0x45   :  { %480 = vmatpush.msrb.mxu2 %v1446_v58  ;;  %500 = vmatpush.msrb.mxu3 %v1451_v59 }
  0x46   :  { %432 = vmatpush.msrb.mxu0 %v1446_v58  ;;  %455 = vmatpush.msrb.mxu1 %v1451_v59 }
  0x47   :  { %481 = vmatpush.msrb.mxu2 %v1472_v9  ;;  %501 = vmatpush.msrb.mxu3 %v1477_v10 }
  0x48   :  { %433 = vmatpush.msrb.mxu0 %v1472_v9  ;;  %456 = vmatpush.msrb.mxu1 %v1477_v10 }
  0x49   :  { %606 = vmatpush.msra.mxu2 %v1359_v38  ;;  %629 = vmatpush.msra.mxu3 %v1364_v39 }
  0x4a   :  { %523 = vmatpush.msra.mxu0 %v1012_v11  ;;  %549 = vmatpush.msra.mxu1 %v1012_v11 }
  0x4b   :  { %607 = vmatpush.msra.mxu2 %v1369_v40  ;;  %630 = vmatpush.msra.mxu3 %v1376_v43 }
  0x4c   :  { %524 = vmatpush.msra.mxu0 %v1011_v12  ;;  %550 = vmatpush.msra.mxu1 %v1011_v12 }
  0x4d   :  { %608 = vmatpush.msra.mxu2 %v1384_v47  ;;  %631 = vmatpush.msra.mxu3 %v1389_v48 }
  0x4e   :  { %525 = vmatpush.msra.mxu0 %v1490_v13  ;;  %551 = vmatpush.msra.mxu1 %v1490_v13 }
  0x4f   :  { %609 = vmatpush.msra.mxu2 %v1398_v50  ;;  %632 = vmatpush.msra.mxu3 %v1403_v51 }
  0x50   :  { %526 = vmatpush.msra.mxu0 %v1009_v15  ;;  %552 = vmatpush.msra.mxu1 %v1009_v15 }
  0x51   :  { %610 = vmatpush.msra.mxu2 %v1414_v53  ;;  %633 = vmatpush.msra.mxu3 %v1419_v54 }
  0x52   :  { %527 = vmatpush.msra.mxu0 %v1008_v16  ;;  %553 = vmatpush.msra.mxu1 %v1008_v16 }
  0x53   :  { %611 = vmatpush.msra.mxu2 %v1429_v56  ;;  %634 = vmatpush.msra.mxu3 %v1434_v57 }
  0x54   :  { %528 = vmatpush.msra.mxu0 %v1007_v17  ;;  %554 = vmatpush.msra.mxu1 %v1007_v17 }
  0x55   :  { %612 = vmatpush.msra.mxu2 %v1446_v58  ;;  %635 = vmatpush.msra.mxu3 %v1451_v59 }
  0x56   :  { %529 = vmatpush.msra.mxu0 %v1006_v18  ;;  %555 = vmatpush.msra.mxu1 %v1006_v18 }
  0x57   :  { %613 = vmatpush.msra.mxu2 %v1472_v9  ;;  %636 = vmatpush.msra.mxu3 %v1477_v10 }
  0x58   :  { %530 = vmatpush.msra.mxu0 %v1005_v19  ;;  %556 = vmatpush.msra.mxu1 %v1005_v19 }
  0x98   :  { %v80_v32 = vpop.f32.mrf.mxu0  ;;  %v103_v33 = vpop.f32.mrf.mxu1 }
  0x99   :  { %v104_v34 = vadd.f32 %v103_v33, %v80_v32 }
  0x9f   :  { %v128_v35 = vpop.f32.mrf.mxu2  ;;  %v148_v36 = vpop.f32.mrf.mxu3 }
  0xa0   :  { %v149_v37 = vadd.f32 %v148_v36, %v128_v35 }
  0xa2   :  { %v177_v41 = vpop.f32.mrf.mxu0  ;;  %v203_v42 = vpop.f32.mrf.mxu1 }
  0xa3   :  { %v180_v44 = vadd.f32 %v177_v41, %v104_v34  ;;  %v206_v45 = vadd.f32 %v203_v42, %v149_v37  ;;  %v1070_v42 = vld [vmem:[%s1702_s4] ss:$0 sm:$0xff]  ;;  %s933_s4 = sshll.u32 %s1707_s9, 4  ;;  %s934_s4 = int_to_ptr.hbm [resolvable:$true] %s933_s4 }
  0xa5   :  { %v207_v49 = vmax.f32 %v180_v44, %v206_v45 }
  0xa7   :  { %v1409_v52 = vadd.f32 %v1069_v46, %v207_v49 }
  0xa9   :  { %v212_v55 = vmax.f32 %v1409_v52, 0.0 }
  0xab   :  { %214 = vrot.lane.b32.xlu0 %v212_v55, %s1099_s10 }
  0xae   :  { %v259_v60 = vpop.f32.mrf.mxu2  ;;  %v282_v61 = vpop.f32.mrf.mxu3 }
  0xaf   :  { %v283_v0 = vadd.f32 %v282_v61, %v259_v60  ;;  %v758_v60 = vld [vmem:[%s1703_s5 + $0x38] sm:$0xff] }
  0xb0   :  { %v1054_v61 = vld [vmem:[%s1703_s5 + $0xb8] sm:$0xff] }
  0xb6   :  { %v307_v62 = vpop.f32.mrf.mxu0  ;;  %v327_v63 = vpop.f32.mrf.mxu1 }
  0xb7   :  { %v328_v1 = vadd.f32 %v327_v63, %v307_v62  ;;  %v1063_v62 = vld [vmem:[%s1703_s5 + $0xf8] sm:$0xff]  ;;  %v1043_v63 = vld [vmem:[%s1703_s5 + $0x70] sm:$0xff] }
  0xb8   :  { %v355_v2 = vpop.f32.mrf.mxu2  ;;  %v381_v3 = vpop.f32.mrf.mxu3 }
  0xb9   :  { %v358_v4 = vadd.f32 %v355_v2, %v283_v0  ;;  %v384_v5 = vadd.f32 %v381_v3, %v328_v1  ;;  %v757_v0 = vld [vmem:[%s1703_s5 + $0x30] sm:$0xff]  ;;  %v1042_v3 = vld [vmem:[%s1703_s5 + $0x68] sm:$0xff] }
  0xba   :  { %v1053_v1 = vld [vmem:[%s1703_s5 + $0xb0] sm:$0xff] }
  0xbb   :  { %v385_v6 = vmax.f32 %v358_v4, %v384_v5  ;;  %v1062_v2 = vld [vmem:[%s1703_s5 + $0xf0] sm:$0xff]  ;;  %v756_v4 = vld [vmem:[%s1703_s5 + $0x28] sm:$0xff] }
  0xbc   :  { %v1052_v5 = vld [vmem:[%s1703_s5 + $0xa8] sm:$0xff] }
  0xbd   :  { %v1463_v7 = vadd.f32 %v1069_v46, %v385_v6  ;;  %v1061_v6 = vld [vmem:[%s1703_s5 + $0xe8] sm:$0xff] }
  0xbf   :  { %v387_v8 = vmax.f32 %v1463_v7, 0.0  ;;  %v1041_v7 = vld [vmem:[%s1703_s5 + $0x60] sm:$0xff] }
  0xc1   :  { %389 = vrot.lane.b32.xlu0 %v387_v8, %s1099_s10 }
 0x11d   :  { %v215_v20 = vpop.permute.xlu0 %214 }
 0x11e   :  { %v217_v21 = vmax.f32 %v212_v55, %v215_v20 }
 0x120   :  { %218 = vst.msk [vmem:[#allocation2 + $0x1] sm:$0xff] %vm59_vm0, %v217_v21  ;;  %v1038_v21 = vld [vmem:[%s1703_s5 + $0x48] sm:$0xff] }
 0x127   :  { %v405_v22 = vld [vmem:[#allocation2 + $0x1] ss:$2 sm:$0xf]  ;;  %v395_v23 = vld [vmem:[#allocation2] ss:$2 sm:$0xf] }
 0x128   :  { %1001 = vmatmul.msk.f32.vlgmr.msrb.gmra.mxu0 %vm59_vm0, %v405_v22  ;;  %1002 = vmatmul.msk.f32.vlgmr.msrb.gmra.mxu1 %vm59_vm0, %v395_v23  ;;  %v462_v24 = vld [vmem:[#allocation2 + $0x2] ss:$2 sm:$0xf]  ;;  %v537_v25 = vld [vmem:[#allocation2 + $0x3] ss:$2 sm:$0xf] }
 0x129   :  { %1003 = vmatmul.msk.f32.vlgmr.msrb.gmra.mxu2 %vm59_vm0, %v462_v24  ;;  %1004 = vmatmul.msk.f32.vlgmr.msrb.gmra.mxu3 %vm59_vm0, %v405_v22  ;;  %v752_v22 = vld [vmem:[%s1703_s5 + $0x8] sm:$0xff] }
 0x12a   :  { %654 = vmatpush.msrb.mxu0 %v1359_v38  ;;  %674 = vmatpush.msrb.mxu1 %v1364_v39  ;;  %v1048_v23 = vld [vmem:[%s1703_s5 + $0x88] sm:$0xff] }
 0x12b   :  { %702 = vmatpush.msrb.mxu2 %v1012_v11  ;;  %728 = vmatpush.msrb.mxu3 %v1012_v11  ;;  %v1040_v11 = vld [vmem:[%s1703_s5 + $0x58] sm:$0xff] }
 0x12c   :  { %655 = vmatpush.msrb.mxu0 %v1369_v40  ;;  %675 = vmatpush.msrb.mxu1 %v1376_v43 }
 0x12d   :  { %703 = vmatpush.msrb.mxu2 %v1011_v12  ;;  %729 = vmatpush.msrb.mxu3 %v1011_v12  ;;  %v754_v12 = vld [vmem:[%s1703_s5 + $0x18] sm:$0xff] }
 0x12e   :  { %656 = vmatpush.msrb.mxu0 %v1384_v47  ;;  %676 = vmatpush.msrb.mxu1 %v1389_v48 }
 0x12f   :  { %704 = vmatpush.msrb.mxu2 %v1490_v13  ;;  %730 = vmatpush.msrb.mxu3 %v1490_v13  ;;  %v1050_v13 = vld [vmem:[%s1703_s5 + $0x98] sm:$0xff] }
 0x130   :  { %1013 = vmatmul.msk.f32.vlgmr.msra.gmra.mxu0 %vm59_vm0, %v462_v24  ;;  %1014 = vmatmul.msk.f32.vlgmr.msra.gmra.mxu1 %vm59_vm0, %v537_v25  ;;  %v1057_v24 = vld [vmem:[%s1703_s5 + $0xc8] sm:$0xff]  ;;  %v1037_v25 = vld [vmem:[%s1703_s5 + $0x40] sm:$0xff] }
 0x131   :  { %657 = vmatpush.msrb.mxu0 %v1398_v50  ;;  %677 = vmatpush.msrb.mxu1 %v1403_v51 }
 0x132   :  { %705 = vmatpush.msrb.mxu2 %v1009_v15  ;;  %731 = vmatpush.msrb.mxu3 %v1009_v15  ;;  %v1039_v15 = vld [vmem:[%s1703_s5 + $0x50] sm:$0xff] }
 0x133   :  { %v390_v26 = vpop.permute.xlu0 %389  ;;  %658 = vmatpush.msrb.mxu0 %v1414_v53  ;;  %678 = vmatpush.msrb.mxu1 %v1419_v54 }
 0x134   :  { %v392_v27 = vmax.f32 %v387_v8, %v390_v26  ;;  %706 = vmatpush.msrb.mxu2 %v1008_v16  ;;  %732 = vmatpush.msrb.mxu3 %v1008_v16  ;;  %v755_v8 = vld [vmem:[%s1703_s5 + $0x20] sm:$0xff] }
 0x135   :  { %659 = vmatpush.msrb.mxu0 %v1429_v56  ;;  %679 = vmatpush.msrb.mxu1 %v1434_v57  ;;  %v751_v26 = vld [vmem:[%s1703_s5] sm:$0xff] }
 0x136   :  { %393 = vst.msk [vmem:[#allocation2 + $0x11] sm:$0xff] %vm59_vm0, %v392_v27  ;;  %707 = vmatpush.msrb.mxu2 %v1007_v17  ;;  %733 = vmatpush.msrb.mxu3 %v1007_v17  ;;  %v753_v17 = vld [vmem:[%s1703_s5 + $0x10] sm:$0xff]  ;;  %v1047_v27 = vld [vmem:[%s1703_s5 + $0x80] sm:$0xff] }
 0x137   :  { %660 = vmatpush.msrb.mxu0 %v1446_v58  ;;  %680 = vmatpush.msrb.mxu1 %v1451_v59  ;;  %v1044_v59 = vld [vmem:[%s1703_s5 + $0x78] sm:$0xff] }
 0x138   :  { %708 = vmatpush.msrb.mxu2 %v1006_v18  ;;  %734 = vmatpush.msrb.mxu3 %v1006_v18  ;;  %v1049_v18 = vld [vmem:[%s1703_s5 + $0x90] sm:$0xff] }
 0x139   :  { %661 = vmatpush.msrb.mxu0 %v1472_v9  ;;  %681 = vmatpush.msrb.mxu1 %v1477_v10  ;;  %v1051_v9 = vld [vmem:[%s1703_s5 + $0xa0] sm:$0xff] }
 0x13a   :  { %709 = vmatpush.msrb.mxu2 %v1005_v19  ;;  %735 = vmatpush.msrb.mxu3 %v1005_v19  ;;  %v1060_v10 = vld [vmem:[%s1703_s5 + $0xe0] sm:$0xff]  ;;  %v1058_v19 = vld [vmem:[%s1703_s5 + $0xd0] sm:$0xff] }
 0x13b   :  { %781 = vmatpush.msra.mxu0 %v1044_v59  ;;  %804 = vmatpush.msra.mxu1 %v758_v60 }
 0x13d   :  { %v586_v28 = vld [vmem:[#allocation2 + $0x11] ss:$2 sm:$0xf]  ;;  %v576_v29 = vld [vmem:[#allocation2 + $0x10] ss:$2 sm:$0xf]  ;;  %782 = vmatpush.msra.mxu0 %v1043_v63  ;;  %805 = vmatpush.msra.mxu1 %v757_v0 }
 0x13e   :  { %1023 = vmatmul.msk.f32.vlgmr.msra.gmra.mxu2 %vm59_vm0, %v586_v28  ;;  %1024 = vmatmul.msk.f32.vlgmr.msra.gmra.mxu3 %vm59_vm0, %v576_v29  ;;  %v642_v30 = vld [vmem:[#allocation2 + $0x12] ss:$2 sm:$0xf]  ;;  %v716_v31 = vld [vmem:[#allocation2 + $0x13] ss:$2 sm:$0xf] }
 0x13f   :  { %1025 = vmatmul.msk.f32.vlgmr.msrb.gmra.mxu0 %vm59_vm0, %v642_v30  ;;  %1026 = vmatmul.msk.f32.vlgmr.msrb.gmra.mxu1 %vm59_vm0, %v586_v28  ;;  %v1056_v28 = vld [vmem:[%s1703_s5 + $0xc0] sm:$0xff] }
 0x140   :  { %838 = vmatpush.msra.mxu2 %v1054_v61  ;;  %873 = vmatpush.msra.mxu3 %v1063_v62 }
 0x141   :  { %783 = vmatpush.msra.mxu0 %v1042_v3  ;;  %806 = vmatpush.msra.mxu1 %v756_v4 }
 0x142   :  { %839 = vmatpush.msra.mxu2 %v1053_v1  ;;  %874 = vmatpush.msra.mxu3 %v1062_v2 }
 0x143   :  { %784 = vmatpush.msra.mxu0 %v1041_v7  ;;  %807 = vmatpush.msra.mxu1 %v755_v8 }
 0x144   :  { %840 = vmatpush.msra.mxu2 %v1052_v5  ;;  %875 = vmatpush.msra.mxu3 %v1061_v6 }
 0x145   :  { %785 = vmatpush.msra.mxu0 %v1040_v11  ;;  %808 = vmatpush.msra.mxu1 %v754_v12 }
 0x146   :  { %1035 = vmatmul.msk.f32.vlgmr.msrb.gmra.mxu2 %vm59_vm0, %v642_v30  ;;  %1036 = vmatmul.msk.f32.vlgmr.msrb.gmra.mxu3 %vm59_vm0, %v716_v31 }
 0x147   :  { %841 = vmatpush.msra.mxu2 %v1051_v9  ;;  %876 = vmatpush.msra.mxu3 %v1060_v10 }
 0x148   :  { %786 = vmatpush.msra.mxu0 %v1039_v15  ;;  %809 = vmatpush.msra.mxu1 %v753_v17 }
 0x149   :  { %842 = vmatpush.msra.mxu2 %v1050_v13  ;;  %877 = vmatpush.msra.mxu3 %v1059_v14 }
 0x14a   :  { %787 = vmatpush.msra.mxu0 %v1038_v21  ;;  %810 = vmatpush.msra.mxu1 %v752_v22 }
 0x14b   :  { %843 = vmatpush.msra.mxu2 %v1049_v18  ;;  %878 = vmatpush.msra.mxu3 %v1058_v19 }
 0x14c   :  { %788 = vmatpush.msra.mxu0 %v1037_v25  ;;  %811 = vmatpush.msra.mxu1 %v751_v26 }
 0x14d   :  { %844 = vmatpush.msra.mxu2 %v1048_v23  ;;  %879 = vmatpush.msra.mxu3 %v1057_v24 }
 0x14f   :  { %845 = vmatpush.msra.mxu2 %v1047_v27  ;;  %880 = vmatpush.msra.mxu3 %v1056_v28 }
 0x1a5   :  { %v435_v32 = vpop.f32.mrf.mxu0  ;;  %v458_v33 = vpop.f32.mrf.mxu1 }
 0x1a6   :  { %v459_v34 = vadd.f32 %v458_v33, %v435_v32 }
 0x1ac   :  { %v483_v35 = vpop.f32.mrf.mxu2  ;;  %v503_v36 = vpop.f32.mrf.mxu3 }
 0x1ad   :  { %v504_v37 = vadd.f32 %v503_v36, %v483_v35  ;;  %v532_v38 = vpop.f32.mrf.mxu0  ;;  %v558_v39 = vpop.f32.mrf.mxu1  ;;  %v895_v35 = vld [vmem:[%s1705_s7 + $0x18] sm:$0xff]  ;;  %v894_v36 = vld [vmem:[%s1705_s7 + $0x10] sm:$0xff] }
 0x1ae   :  { %v535_v40 = vadd.f32 %v532_v38, %v459_v34  ;;  %916 = vmatpush.msrb.mxu0 %v895_v35  ;;  %v892_v38 = vld [vmem:[%s1705_s7] sm:$0xff] }
 0x1af   :  { %v561_v41 = vadd.f32 %v558_v39, %v504_v37  ;;  %v893_v37 = vld [vmem:[%s1705_s7 + $0x8] sm:$0xff]  ;;  %s1101_s7 = smov [#allocation4]  }
 0x1b0   :  { %917 = vmatpush.msrb.mxu0 %v894_v36  ;;  %s931_s11 = sshll.u32 %s1101_s7, 4  ;;  %s932_s11 = int_to_ptr.vmem [resolvable:$true] %s931_s11 }
 0x1b1   :  { %v562_v43 = vmax.f32 %v535_v40, %v561_v41 }
 0x1b2   :  { %918 = vmatpush.msrb.mxu0 %v893_v37 }
 0x1b3   :  { %v566_v44 = vadd.f32 %v1070_v42, %v562_v43 }
 0x1b4   :  { %919 = vmatpush.msrb.mxu0 %v892_v38 }
 0x1b5   :  { %v567_v45 = vmax.f32 %v566_v44, 0.0  ;;  %v1071_v44 = vld [vmem:[%s1704_s6] ss:$0 sm:$0xff] }
 0x1b7   :  { %569 = vrot.lane.b32.xlu1 %v567_v45, %s1099_s10 }
 0x1bc   :  { %v663_v48 = vpop.f32.mrf.mxu0  ;;  %v683_v49 = vpop.f32.mrf.mxu1 }
 0x1bd   :  { %v684_v50 = vadd.f32 %v683_v49, %v663_v48  ;;  %v1072_v49 = vld [vmem:[%s1706_s8] ss:$0 sm:$0xff] }
 0x1c1   :  { %v615_v46 = vpop.f32.mrf.mxu2  ;;  %v638_v47 = vpop.f32.mrf.mxu3 }
 0x1c2   :  { %v639_v51 = vadd.f32 %v638_v47, %v615_v46 }
 0x1c9   :  { %v711_v52 = vpop.f32.mrf.mxu2  ;;  %v737_v53 = vpop.f32.mrf.mxu3 }
 0x1ca   :  { %v714_v54 = vadd.f32 %v711_v52, %v639_v51  ;;  %v740_v55 = vadd.f32 %v737_v53, %v684_v50 }
 0x1cc   :  { %v741_v56 = vmax.f32 %v714_v54, %v740_v55 }
 0x1ce   :  { %v1567_v57 = vadd.f32 %v1070_v42, %v741_v56 }
 0x1d0   :  { %v743_v58 = vmax.f32 %v1567_v57, 0.0 }
 0x1d2   :  { %745 = vrot.lane.b32.xlu1 %v743_v58, %s1099_s10 }
 0x229   :  { %v570_v16 = vpop.permute.xlu1 %569 }
 0x22a   :  { %v572_v20 = vmax.f32 %v567_v45, %v570_v16 }
 0x22c   :  { %574 = vst.msk [vmem:[#allocation3] sm:$0xf] %vm573_vm2, %v572_v20 }
 0x244   :  { %v746_v29 = vpop.permute.xlu1 %745 }
 0x245   :  { %v748_v30 = vmax.f32 %v743_v58, %v746_v29 }
 0x247   :  { %749 = vst.msk [vmem:[#allocation3 + $0x8] sm:$0xf] %vm573_vm2, %v748_v30 }
 0x24e   :  { %v760_v31 = vld [vmem:[#allocation3 + $0x1] ss:$8 sm:$0x3]  ;;  %v750_v32 = vld [vmem:[#allocation3] ss:$8 sm:$0x3] }
 0x24f   :  { %1045 = vmatmul.msk.f32.vlgmr.msra.gmra.mxu0 %vm59_vm0, %v760_v31  ;;  %1046 = vmatmul.msk.f32.vlgmr.msra.gmra.mxu1 %vm59_vm0, %v750_v32  ;;  %v817_v33 = vld [vmem:[#allocation3 + $0x2] ss:$8 sm:$0x3]  ;;  %v852_v34 = vld [vmem:[#allocation3 + $0x3] ss:$8 sm:$0x3] }
 0x250   :  { %1055 = vmatmul.msk.f32.vlgmr.msra.gmra.mxu2 %vm59_vm0, %v817_v33  ;;  %1064 = vmatmul.msk.f32.vlgmr.msra.gmra.mxu3 %vm59_vm0, %v852_v34 }
 0x2cc   :  { %v790_v39 = vpop.f32.mrf.mxu0  ;;  %v813_v40 = vpop.f32.mrf.mxu1 }
 0x2cd   :  { %v814_v41 = vadd.f32 %v813_v40, %v790_v39 }
 0x2d3   :  { %v847_v42 = vpop.f32.mrf.mxu2  ;;  %v882_v45 = vpop.f32.mrf.mxu3 }
 0x2d4   :  { %v850_v43 = vadd.f32 %v847_v42, %v814_v41 }
 0x2d6   :  { %v885_v46 = vadd.f32 %v882_v45, %v850_v43 }
 0x2d8   :  { %v890_v47 = vadd.f32 %v1071_v44, %v885_v46 }
 0x2da   :  { %v891_v48 = vmax.f32 %v890_v47, 0.0 }
 0x2dc   :  { %1065 = vmatmul.msk.f32.vlgmr.msrb.gmra.mxu0 %vm900_vm3, %v891_v48 }
 0x359   :  { %v921_v50 = vpop.f32.mrf.mxu0 }
 0x35a   :  { %v922_v51 = vadd.f32 %v1072_v49, %v921_v50 }
 0x35c   :  { %925 = vst.msk [vmem:[#allocation4] sm:$0x3] %vm924_vm4, %v922_v51 }
 0x35d   :  { %936 = dma.vmem_to_hbm [thread:$0]  %s932_s11, 32, %s934_s4, [#allocation5]  }
 0x35e   :  { %1097 = dma.done.wait [#allocation5], 32  }
 0x35f   :  { %1098 = vsyncadd [#allocation5], 4294967264 }
 0x360   :  { %941 = vsyncpa [#allocation5], 1 }

</bundles_post_ra>
